<compile_context>
chip_gen: v6e
topology: v6e:2x2x1
jax: 0.10.0
libtpu: 0.0.40
codegen_flags: <defaults>
</compile_context>

<pallas_src>
import jax
import jax.numpy as jnp
from jax.experimental import pallas as pl
from jax.experimental.pallas import tpu as pltpu

N = 8                     # graph nodes (fully connected incl. self-loops)
FN = 32                   # visual node feature dim (n_f)
FW = 16                   # word2vec feature dim
FS = 16                   # spatial edge feature dim (s_f)
DE = FN + FS + FN         # edge_fc input dim = 80
DL = FW + FW              # edge_fc_lang input dim = 32
FN_OUT = FN               # node_fc output dim
FW_OUT = FW               # node_fc_lang output dim
NEG_SLOPE = 0.2           # LeakyReLU slope used by get_activation('LeakyReLU')


def _gnn_kernel(nf_ref, w2v_ref, sf_ref,
                we_src_ref, we_sf_ref, we_dst_ref, be_ref,
                wel_src_ref, wel_dst_ref, bel_ref,
                wa_ref, wal_ref, ba_ref, bal_ref,
                wn1_ref, wn2_ref, bn_ref,
                wnl1_ref, wnl2_ref, bnl_ref,
                out_nf_ref, out_nfl_ref):
    n, fn = nf_ref.shape
    nf = nf_ref[...]                      # (N, FN)
    wv = w2v_ref[...]                     # (N, FW)

    # ---- H_H_EdgeApplyModule (visual): Linear over cat[src.n_f, s_f, dst.n_f] + ReLU.
    # src/dst contributions computed once per node and broadcast over the N^2 edges.
    src_c = jnp.dot(nf, we_src_ref[...], preferred_element_type=jnp.float32)    # (N, FN)
    dst_c = jnp.dot(nf, we_dst_ref[...], preferred_element_type=jnp.float32)    # (N, FN)
    sf_c = jnp.dot(sf_ref[...], we_sf_ref[...],
                   preferred_element_type=jnp.float32)                          # (N*N, FN)
    sf_c = sf_c.reshape(n, n, fn)                                               # [dst, src, f]
    e_f = jnp.maximum(src_c[None, :, :] + dst_c[:, None, :] + sf_c + be_ref[...], 0.0)

    # ---- H_H_EdgeApplyModule (lang): Linear over cat[src.w2v, dst.w2v] + ReLU.
    srcl_c = jnp.dot(wv, wel_src_ref[...], preferred_element_type=jnp.float32)  # (N, FW)
    dstl_c = jnp.dot(wv, wel_dst_ref[...], preferred_element_type=jnp.float32)  # (N, FW)
    e_fl = jnp.maximum(srcl_c[None, :, :] + dstl_c[:, None, :] + bel_ref[...], 0.0)

    # ---- E_AttentionModule1: logits as (N_dst, N_src) so the softmax is a lane reduce.
    a = jnp.sum(e_f * wa_ref[...], axis=-1) + ba_ref[0]              # (N, N)
    a = jnp.where(a >= 0.0, a, NEG_SLOPE * a)                        # LeakyReLU(0.2)
    al = jnp.sum(e_fl * wal_ref[...], axis=-1) + bal_ref[0]          # (N, N)
    al = jnp.where(al >= 0.0, al, NEG_SLOPE * al)

    # ---- _reduce_func: softmax over the mailbox (incoming-edge / src) axis.
    a = a - jnp.max(a, axis=-1, keepdims=True)
    ea = jnp.exp(a)
    alpha = ea * pl.reciprocal(jnp.sum(ea, axis=-1, keepdims=True), approx=True)
    al = al - jnp.max(al, axis=-1, keepdims=True)
    eal = jnp.exp(al)
    alpha_l = eal * pl.reciprocal(jnp.sum(eal, axis=-1, keepdims=True), approx=True)

    z_f = jnp.sum(alpha[:, :, None] * (nf[None, :, :] + e_f), axis=1)        # (N, FN)
    z_fl = jnp.dot(alpha_l, wv, preferred_element_type=jnp.float32)          # (N, FW)

    # ---- H_NodeApplyModule: Linear over cat[n_f, z_f] / cat[w2v, z_f_lang] + ReLU.
    n_out = (jnp.dot(nf, wn1_ref[...], preferred_element_type=jnp.float32)
             + jnp.dot(z_f, wn2_ref[...], preferred_element_type=jnp.float32)
             + bn_ref[...])
    out_nf_ref[...] = jnp.maximum(n_out, 0.0)

    nl_out = (jnp.dot(wv, wnl1_ref[...], preferred_element_type=jnp.float32)
              + jnp.dot(z_fl, wnl2_ref[...], preferred_element_type=jnp.float32)
              + bnl_ref[...])
    out_nfl_ref[...] = jnp.maximum(nl_out, 0.0)


def gnn_forward(n_f, w2v, s_f, params):
    """Split concat-Linear weights + single grid-less pallas_call (everything fused)."""
    n = n_f.shape[0]
    p = params
    # Concat-Linear == sum of per-slice matmuls (exact decomposition).
    we_src, we_sf, we_dst = p['W_e'][:FN], p['W_e'][FN:FN + FS], p['W_e'][FN + FS:]
    wel_src, wel_dst = p['W_el'][:FW], p['W_el'][FW:]
    wn1, wn2 = p['W_n'][:FN], p['W_n'][FN:]
    wnl1, wnl2 = p['W_nl'][:FW], p['W_nl'][FW:]
    w_a = p['w_a'].reshape(1, FN)
    w_al = p['w_al'].reshape(1, FW)
    b_a = p['b_a'].reshape(1)            # scalar -> SMEM
    b_al = p['b_al'].reshape(1)          # scalar -> SMEM
    s_f_flat = s_f.reshape(n * n, FS)    # row j*n + i == edge (src i -> dst j)

    def vmem():
        return pl.BlockSpec(memory_space=pltpu.MemorySpace.VMEM)

    def smem():
        return pl.BlockSpec(memory_space=pltpu.MemorySpace.SMEM)

    args_and_specs = [
        (n_f, vmem()), (w2v, vmem()), (s_f_flat, vmem()),
        (we_src, vmem()), (we_sf, vmem()), (we_dst, vmem()), (p['b_e'], vmem()),
        (wel_src, vmem()), (wel_dst, vmem()), (p['b_el'], vmem()),
        (w_a, vmem()), (w_al, vmem()), (b_a, smem()), (b_al, smem()),
        (wn1, vmem()), (wn2, vmem()), (p['b_n'], vmem()),
        (wnl1, vmem()), (wnl2, vmem()), (p['b_nl'], vmem()),
    ]
    args = [a for a, _ in args_and_specs]
    in_specs = [s for _, s in args_and_specs]

    out_shape = (jax.ShapeDtypeStruct((n, FN_OUT), jnp.float32),
                 jax.ShapeDtypeStruct((n, FW_OUT), jnp.float32))
    out_specs = (pl.BlockSpec(memory_space=pltpu.MemorySpace.VMEM),
                 pl.BlockSpec(memory_space=pltpu.MemorySpace.VMEM))

    return pl.pallas_call(
        _gnn_kernel,
        out_shape=out_shape,
        in_specs=in_specs,
        out_specs=out_specs,
    )(*args)


def gnn_reference(n_f, w2v, s_f, p):
    """Plain-JAX reference of the same forward pass (for validation)."""
    n = n_f.shape[0]
    src_nf = jnp.broadcast_to(n_f[None, :, :], (n, n, FN))
    dst_nf = jnp.broadcast_to(n_f[:, None, :], (n, n, FN))
    edge_in = jnp.concatenate([src_nf, s_f, dst_nf], axis=-1)
    edge_lang = jnp.concatenate([jnp.broadcast_to(w2v[None, :, :], (n, n, FW)),
                                 jnp.broadcast_to(w2v[:, None, :], (n, n, FW))], axis=-1)
    e_f = jax.nn.relu(edge_in @ p['W_e'] + p['b_e'][0])
    e_fl = jax.nn.relu(edge_lang @ p['W_el'] + p['b_el'][0])
    a = (e_f @ p['w_a'])[..., 0] + p['b_a'][0, 0]
    a = jnp.where(a >= 0.0, a, NEG_SLOPE * a)
    al = (e_fl @ p['w_al'])[..., 0] + p['b_al'][0, 0]
    al = jnp.where(al >= 0.0, al, NEG_SLOPE * al)
    alpha = jax.nn.softmax(a, axis=1)[..., None]
    alpha_l = jax.nn.softmax(al, axis=1)[..., None]
    z_f = jnp.sum(alpha * (src_nf + e_f), axis=1)
    z_fl = jnp.sum(alpha_l * jnp.broadcast_to(w2v[None, :, :], (n, n, FW)), axis=1)
    new_nf = jax.nn.relu(jnp.concatenate([n_f, z_f], -1) @ p['W_n'] + p['b_n'][0])
    new_nfl = jax.nn.relu(jnp.concatenate([w2v, z_fl], -1) @ p['W_nl'] + p['b_nl'][0])
    return new_nf, new_nfl


def init_params(key):
    """Deterministic synthetic weights (module-style: full concat-Linear matrices)."""
    ks = jax.random.split(key, 6)

    def lin(k, fan_in, fan_out):
        kw, kb = jax.random.split(k)
        w = jax.random.normal(kw, (fan_in, fan_out), jnp.float32) * (1.0 / fan_in ** 0.5)
        b = jax.random.normal(kb, (1, fan_out), jnp.float32) * 0.01
        return w, b

    W_e, b_e = lin(ks[0], DE, FN)            # edge_fc
    W_el, b_el = lin(ks[1], DL, FW)          # edge_fc_lang
    w_a, b_a = lin(ks[2], FN, 1)             # attn_fc (out dim 1)
    w_al, b_al = lin(ks[3], FW, 1)           # attn_fc_lang
    W_n, b_n = lin(ks[4], 2 * FN, FN_OUT)    # node_fc on cat([n_f, z_f])
    W_nl, b_nl = lin(ks[5], 2 * FW, FW_OUT)  # node_fc_lang on cat([w2v, z_f_lang])
    return dict(W_e=W_e, b_e=b_e, W_el=W_el, b_el=b_el,
                w_a=w_a, b_a=b_a, w_al=w_al, b_al=b_al,
                W_n=W_n, b_n=b_n, W_nl=W_nl, b_nl=b_nl)


if __name__ == "__main__":
    key = jax.random.PRNGKey(0)
    k1, k2, k3, kp = jax.random.split(key, 4)
    n_f = jax.random.normal(k1, (N, FN), jnp.float32)      # node visual features
    w2v = jax.random.normal(k2, (N, FW), jnp.float32)      # node word2vec features
    s_f = jax.random.normal(k3, (N, N, FS), jnp.float32)   # per-edge spatial features

    params = init_params(kp)

    fwd = jax.jit(gnn_forward)
    new_nf, new_nfl = fwd(n_f, w2v, s_f, params)
    jax.block_until_ready((new_nf, new_nfl))

    ref_nf, ref_nfl = gnn_reference(n_f, w2v, s_f, params)
    # Slightly loose tolerance: the softmax denominators use the EUP approximate
    # reciprocal (pl.reciprocal(..., approx=True)).
    assert jnp.allclose(new_nf, ref_nf, rtol=1e-2, atol=1e-2)
    assert jnp.allclose(new_nfl, ref_nfl, rtol=1e-2, atol=1e-2)

    # TODO(synk): DGL graph mutation (g.ndata.pop / eval-mode alpha outputs) and the
    # unused CBS Gaussian/LoG Conv1d path (use_cbs=False) are not represented.
    print("KERNEL_OK")
</pallas_src>

<mosaic_0001>
module attributes {stable_mosaic.version = 11 : i64} {
  func.func @_gnn_kernel(%arg0: memref<8x32xf32, #tpu.memory_space<vmem>>, %arg1: memref<8x16xf32, #tpu.memory_space<vmem>>, %arg2: memref<64x16xf32, #tpu.memory_space<vmem>>, %arg3: memref<32x32xf32, #tpu.memory_space<vmem>>, %arg4: memref<16x32xf32, #tpu.memory_space<vmem>>, %arg5: memref<32x32xf32, #tpu.memory_space<vmem>>, %arg6: memref<1x32xf32, #tpu.memory_space<vmem>>, %arg7: memref<16x16xf32, #tpu.memory_space<vmem>>, %arg8: memref<16x16xf32, #tpu.memory_space<vmem>>, %arg9: memref<1x16xf32, #tpu.memory_space<vmem>>, %arg10: memref<1x32xf32, #tpu.memory_space<vmem>>, %arg11: memref<1x16xf32, #tpu.memory_space<vmem>>, %arg12: memref<1xf32, #tpu.memory_space<smem>>, %arg13: memref<1xf32, #tpu.memory_space<smem>>, %arg14: memref<32x32xf32, #tpu.memory_space<vmem>>, %arg15: memref<32x32xf32, #tpu.memory_space<vmem>>, %arg16: memref<1x32xf32, #tpu.memory_space<vmem>>, %arg17: memref<16x16xf32, #tpu.memory_space<vmem>>, %arg18: memref<16x16xf32, #tpu.memory_space<vmem>>, %arg19: memref<1x16xf32, #tpu.memory_space<vmem>>, %arg20: memref<8x32xf32, #tpu.memory_space<vmem>>, %arg21: memref<8x16xf32, #tpu.memory_space<vmem>>) attributes {dimension_semantics = [], scalar_prefetch = 0 : i64, scratch_operands = 0 : i64, tpu.core_type = #tpu.core_type<tc>} {
    %c0 = arith.constant 0 : index
    %c0_0 = arith.constant 0 : index
    %0 = vector.load %arg0[%c0, %c0_0] : memref<8x32xf32, #tpu.memory_space<vmem>>, vector<8x32xf32>
    %c0_1 = arith.constant 0 : index
    %c0_2 = arith.constant 0 : index
    %1 = vector.load %arg1[%c0_1, %c0_2] : memref<8x16xf32, #tpu.memory_space<vmem>>, vector<8x16xf32>
    %c0_3 = arith.constant 0 : index
    %c0_4 = arith.constant 0 : index
    %2 = vector.load %arg3[%c0_3, %c0_4] : memref<32x32xf32, #tpu.memory_space<vmem>>, vector<32x32xf32>
    %cst = arith.constant dense<0.000000e+00> : vector<8x32xf32>
    %3 = tpu.matmul %0, %2, %cst {dimension_numbers = #tpu.dot_dimension_numbers<[1], [0], [0], [1], [0, 0, 1, 1], [], []>} : vector<8x32xf32>, vector<32x32xf32>, vector<8x32xf32> -> vector<8x32xf32>
    %c0_5 = arith.constant 0 : index
    %c0_6 = arith.constant 0 : index
    %4 = vector.load %arg5[%c0_5, %c0_6] : memref<32x32xf32, #tpu.memory_space<vmem>>, vector<32x32xf32>
    %cst_7 = arith.constant dense<0.000000e+00> : vector<8x32xf32>
    %5 = tpu.matmul %0, %4, %cst_7 {dimension_numbers = #tpu.dot_dimension_numbers<[1], [0], [0], [1], [0, 0, 1, 1], [], []>} : vector<8x32xf32>, vector<32x32xf32>, vector<8x32xf32> -> vector<8x32xf32>
    %c0_8 = arith.constant 0 : index
    %c0_9 = arith.constant 0 : index
    %6 = vector.load %arg2[%c0_8, %c0_9] : memref<64x16xf32, #tpu.memory_space<vmem>>, vector<64x16xf32>
    %c0_10 = arith.constant 0 : index
    %c0_11 = arith.constant 0 : index
    %7 = vector.load %arg4[%c0_10, %c0_11] : memref<16x32xf32, #tpu.memory_space<vmem>>, vector<16x32xf32>
    %cst_12 = arith.constant dense<0.000000e+00> : vector<64x32xf32>
    %8 = tpu.matmul %6, %7, %cst_12 {dimension_numbers = #tpu.dot_dimension_numbers<[1], [0], [0], [1], [0, 0, 1, 1], [], []>} : vector<64x16xf32>, vector<16x32xf32>, vector<64x32xf32> -> vector<64x32xf32>
    %9 = vector.shape_cast %8 : vector<64x32xf32> to vector<8x8x32xf32>
    %10 = vector.shape_cast %3 : vector<8x32xf32> to vector<1x8x32xf32>
    %11 = vector.shape_cast %5 : vector<8x32xf32> to vector<8x1x32xf32>
    %12 = vector.broadcast %10 : vector<1x8x32xf32> to vector<8x8x32xf32>
    %13 = vector.broadcast %11 : vector<8x1x32xf32> to vector<8x8x32xf32>
    %14 = arith.addf %12, %13 : vector<8x8x32xf32>
    %15 = arith.addf %14, %9 : vector<8x8x32xf32>
    %c0_13 = arith.constant 0 : index
    %c0_14 = arith.constant 0 : index
    %16 = vector.load %arg6[%c0_13, %c0_14] : memref<1x32xf32, #tpu.memory_space<vmem>>, vector<1x32xf32>
    %17 = vector.shape_cast %16 : vector<1x32xf32> to vector<1x1x32xf32>
    %18 = vector.broadcast %17 : vector<1x1x32xf32> to vector<8x8x32xf32>
    %19 = arith.addf %15, %18 : vector<8x8x32xf32>
    %cst_15 = arith.constant 0.000000e+00 : f32
    %20 = vector.broadcast %cst_15 : f32 to vector<8x8x32xf32>
    %21 = arith.maximumf %19, %20 : vector<8x8x32xf32>
    %c0_16 = arith.constant 0 : index
    %c0_17 = arith.constant 0 : index
    %22 = vector.load %arg7[%c0_16, %c0_17] : memref<16x16xf32, #tpu.memory_space<vmem>>, vector<16x16xf32>
    %cst_18 = arith.constant dense<0.000000e+00> : vector<8x16xf32>
    %23 = tpu.matmul %1, %22, %cst_18 {dimension_numbers = #tpu.dot_dimension_numbers<[1], [0], [0], [1], [0, 0, 1, 1], [], []>} : vector<8x16xf32>, vector<16x16xf32>, vector<8x16xf32> -> vector<8x16xf32>
    %c0_19 = arith.constant 0 : index
    %c0_20 = arith.constant 0 : index
    %24 = vector.load %arg8[%c0_19, %c0_20] : memref<16x16xf32, #tpu.memory_space<vmem>>, vector<16x16xf32>
    %cst_21 = arith.constant dense<0.000000e+00> : vector<8x16xf32>
    %25 = tpu.matmul %1, %24, %cst_21 {dimension_numbers = #tpu.dot_dimension_numbers<[1], [0], [0], [1], [0, 0, 1, 1], [], []>} : vector<8x16xf32>, vector<16x16xf32>, vector<8x16xf32> -> vector<8x16xf32>
    %26 = vector.shape_cast %23 : vector<8x16xf32> to vector<1x8x16xf32>
    %27 = vector.shape_cast %25 : vector<8x16xf32> to vector<8x1x16xf32>
    %28 = vector.broadcast %26 : vector<1x8x16xf32> to vector<8x8x16xf32>
    %29 = vector.broadcast %27 : vector<8x1x16xf32> to vector<8x8x16xf32>
    %30 = arith.addf %28, %29 : vector<8x8x16xf32>
    %c0_22 = arith.constant 0 : index
    %c0_23 = arith.constant 0 : index
    %31 = vector.load %arg9[%c0_22, %c0_23] : memref<1x16xf32, #tpu.memory_space<vmem>>, vector<1x16xf32>
    %32 = vector.shape_cast %31 : vector<1x16xf32> to vector<1x1x16xf32>
    %33 = vector.broadcast %32 : vector<1x1x16xf32> to vector<8x8x16xf32>
    %34 = arith.addf %30, %33 : vector<8x8x16xf32>
    %cst_24 = arith.constant 0.000000e+00 : f32
    %35 = vector.broadcast %cst_24 : f32 to vector<8x8x16xf32>
    %36 = arith.maximumf %34, %35 : vector<8x8x16xf32>
    %c0_25 = arith.constant 0 : index
    %c0_26 = arith.constant 0 : index
    %37 = vector.load %arg10[%c0_25, %c0_26] : memref<1x32xf32, #tpu.memory_space<vmem>>, vector<1x32xf32>
    %38 = vector.shape_cast %37 : vector<1x32xf32> to vector<1x1x32xf32>
    %39 = vector.broadcast %38 : vector<1x1x32xf32> to vector<8x8x32xf32>
    %40 = arith.mulf %21, %39 : vector<8x8x32xf32>
    %cst_27 = arith.constant dense<0.000000e+00> : vector<8x8xf32>
    %41 = vector.multi_reduction <add>, %40, %cst_27 [2] : vector<8x8x32xf32> to vector<8x8xf32>
    %c0_28 = arith.constant 0 : index
    %42 = memref.load %arg12[%c0_28] : memref<1xf32, #tpu.memory_space<smem>>
    %43 = vector.broadcast %42 : f32 to vector<8x8xf32>
    %44 = arith.addf %41, %43 : vector<8x8xf32>
    %cst_29 = arith.constant 0.000000e+00 : f32
    %45 = vector.broadcast %cst_29 : f32 to vector<8x8xf32>
    %46 = arith.cmpf oge, %44, %45 : vector<8x8xf32>
    %cst_30 = arith.constant 2.000000e-01 : f32
    %47 = vector.broadcast %cst_30 : f32 to vector<8x8xf32>
    %48 = arith.mulf %47, %44 : vector<8x8xf32>
    %49 = arith.select %46, %44, %48 : vector<8x8xi1>, vector<8x8xf32>
    %c0_31 = arith.constant 0 : index
    %c0_32 = arith.constant 0 : index
    %50 = vector.load %arg11[%c0_31, %c0_32] : memref<1x16xf32, #tpu.memory_space<vmem>>, vector<1x16xf32>
    %51 = vector.shape_cast %50 : vector<1x16xf32> to vector<1x1x16xf32>
    %52 = vector.broadcast %51 : vector<1x1x16xf32> to vector<8x8x16xf32>
    %53 = arith.mulf %36, %52 : vector<8x8x16xf32>
    %cst_33 = arith.constant dense<0.000000e+00> : vector<8x8xf32>
    %54 = vector.multi_reduction <add>, %53, %cst_33 [2] : vector<8x8x16xf32> to vector<8x8xf32>
    %c0_34 = arith.constant 0 : index
    %55 = memref.load %arg13[%c0_34] : memref<1xf32, #tpu.memory_space<smem>>
    %56 = vector.broadcast %55 : f32 to vector<8x8xf32>
    %57 = arith.addf %54, %56 : vector<8x8xf32>
    %cst_35 = arith.constant 0.000000e+00 : f32
    %58 = vector.broadcast %cst_35 : f32 to vector<8x8xf32>
    %59 = arith.cmpf oge, %57, %58 : vector<8x8xf32>
    %cst_36 = arith.constant 2.000000e-01 : f32
    %60 = vector.broadcast %cst_36 : f32 to vector<8x8xf32>
    %61 = arith.mulf %60, %57 : vector<8x8xf32>
    %62 = arith.select %59, %57, %61 : vector<8x8xi1>, vector<8x8xf32>
    %cst_37 = arith.constant dense<0xFF800000> : vector<8xf32>
    %63 = vector.multi_reduction <maximumf>, %49, %cst_37 [1] : vector<8x8xf32> to vector<8xf32>
    %64 = vector.shape_cast %63 : vector<8xf32> to vector<8x1xf32>
    %65 = vector.broadcast %64 : vector<8x1xf32> to vector<8x8xf32>
    %66 = arith.subf %49, %65 : vector<8x8xf32>
    %67 = math.exp %66 : vector<8x8xf32>
    %cst_38 = arith.constant dense<0.000000e+00> : vector<8xf32>
    %68 = vector.multi_reduction <add>, %67, %cst_38 [1] : vector<8x8xf32> to vector<8xf32>
    %69 = vector.shape_cast %68 : vector<8xf32> to vector<8x1xf32>
    %70 = tpu.reciprocal %69 {approx = true} : vector<8x1xf32> -> vector<8x1xf32>
    %71 = vector.broadcast %70 : vector<8x1xf32> to vector<8x8xf32>
    %72 = arith.mulf %67, %71 : vector<8x8xf32>
    %cst_39 = arith.constant dense<0xFF800000> : vector<8xf32>
    %73 = vector.multi_reduction <maximumf>, %62, %cst_39 [1] : vector<8x8xf32> to vector<8xf32>
    %74 = vector.shape_cast %73 : vector<8xf32> to vector<8x1xf32>
    %75 = vector.broadcast %74 : vector<8x1xf32> to vector<8x8xf32>
    %76 = arith.subf %62, %75 : vector<8x8xf32>
    %77 = math.exp %76 : vector<8x8xf32>
    %cst_40 = arith.constant dense<0.000000e+00> : vector<8xf32>
    %78 = vector.multi_reduction <add>, %77, %cst_40 [1] : vector<8x8xf32> to vector<8xf32>
    %79 = vector.shape_cast %78 : vector<8xf32> to vector<8x1xf32>
    %80 = tpu.reciprocal %79 {approx = true} : vector<8x1xf32> -> vector<8x1xf32>
    %81 = vector.broadcast %80 : vector<8x1xf32> to vector<8x8xf32>
    %82 = arith.mulf %77, %81 : vector<8x8xf32>
    %83 = vector.shape_cast %72 : vector<8x8xf32> to vector<8x8x1xf32>
    %84 = vector.shape_cast %0 : vector<8x32xf32> to vector<1x8x32xf32>
    %85 = vector.broadcast %84 : vector<1x8x32xf32> to vector<8x8x32xf32>
    %86 = arith.addf %85, %21 : vector<8x8x32xf32>
    %87 = vector.broadcast %83 : vector<8x8x1xf32> to vector<8x8x32xf32>
    %88 = arith.mulf %87, %86 : vector<8x8x32xf32>
    %cst_41 = arith.constant dense<0.000000e+00> : vector<8x32xf32>
    %89 = vector.multi_reduction <add>, %88, %cst_41 [1] : vector<8x8x32xf32> to vector<8x32xf32>
    %cst_42 = arith.constant dense<0.000000e+00> : vector<8x16xf32>
    %90 = tpu.matmul %82, %1, %cst_42 {dimension_numbers = #tpu.dot_dimension_numbers<[1], [0], [0], [1], [0, 0, 1, 1], [], []>} : vector<8x8xf32>, vector<8x16xf32>, vector<8x16xf32> -> vector<8x16xf32>
    %c0_43 = arith.constant 0 : index
    %c0_44 = arith.constant 0 : index
    %91 = vector.load %arg14[%c0_43, %c0_44] : memref<32x32xf32, #tpu.memory_space<vmem>>, vector<32x32xf32>
    %cst_45 = arith.constant dense<0.000000e+00> : vector<8x32xf32>
    %92 = tpu.matmul %0, %91, %cst_45 {dimension_numbers = #tpu.dot_dimension_numbers<[1], [0], [0], [1], [0, 0, 1, 1], [], []>} : vector<8x32xf32>, vector<32x32xf32>, vector<8x32xf32> -> vector<8x32xf32>
    %c0_46 = arith.constant 0 : index
    %c0_47 = arith.constant 0 : index
    %93 = vector.load %arg15[%c0_46, %c0_47] : memref<32x32xf32, #tpu.memory_space<vmem>>, vector<32x32xf32>
    %cst_48 = arith.constant dense<0.000000e+00> : vector<8x32xf32>
    %94 = tpu.matmul %89, %93, %cst_48 {dimension_numbers = #tpu.dot_dimension_numbers<[1], [0], [0], [1], [0, 0, 1, 1], [], []>} : vector<8x32xf32>, vector<32x32xf32>, vector<8x32xf32> -> vector<8x32xf32>
    %95 = arith.addf %92, %94 : vector<8x32xf32>
    %c0_49 = arith.constant 0 : index
    %c0_50 = arith.constant 0 : index
    %96 = vector.load %arg16[%c0_49, %c0_50] : memref<1x32xf32, #tpu.memory_space<vmem>>, vector<1x32xf32>
    %97 = vector.broadcast %96 : vector<1x32xf32> to vector<8x32xf32>
    %98 = arith.addf %95, %97 : vector<8x32xf32>
    %cst_51 = arith.constant 0.000000e+00 : f32
    %99 = vector.broadcast %cst_51 : f32 to vector<8x32xf32>
    %100 = arith.maximumf %98, %99 : vector<8x32xf32>
    %c0_52 = arith.constant 0 : index
    %c0_53 = arith.constant 0 : index
    %101 = vector.load %arg20[%c0_52, %c0_53] : memref<8x32xf32, #tpu.memory_space<vmem>>, vector<8x32xf32>
    tpu.vector_store %arg20[%c0_52, %c0_53], %100 {strides = array<i32>} : memref<8x32xf32, #tpu.memory_space<vmem>>, vector<8x32xf32>,
    %c0_54 = arith.constant 0 : index
    %c0_55 = arith.constant 0 : index
    %102 = vector.load %arg17[%c0_54, %c0_55] : memref<16x16xf32, #tpu.memory_space<vmem>>, vector<16x16xf32>
    %cst_56 = arith.constant dense<0.000000e+00> : vector<8x16xf32>
    %103 = tpu.matmul %1, %102, %cst_56 {dimension_numbers = #tpu.dot_dimension_numbers<[1], [0], [0], [1], [0, 0, 1, 1], [], []>} : vector<8x16xf32>, vector<16x16xf32>, vector<8x16xf32> -> vector<8x16xf32>
    %c0_57 = arith.constant 0 : index
    %c0_58 = arith.constant 0 : index
    %104 = vector.load %arg18[%c0_57, %c0_58] : memref<16x16xf32, #tpu.memory_space<vmem>>, vector<16x16xf32>
    %cst_59 = arith.constant dense<0.000000e+00> : vector<8x16xf32>
    %105 = tpu.matmul %90, %104, %cst_59 {dimension_numbers = #tpu.dot_dimension_numbers<[1], [0], [0], [1], [0, 0, 1, 1], [], []>} : vector<8x16xf32>, vector<16x16xf32>, vector<8x16xf32> -> vector<8x16xf32>
    %106 = arith.addf %103, %105 : vector<8x16xf32>
    %c0_60 = arith.constant 0 : index
    %c0_61 = arith.constant 0 : index
    %107 = vector.load %arg19[%c0_60, %c0_61] : memref<1x16xf32, #tpu.memory_space<vmem>>, vector<1x16xf32>
    %108 = vector.broadcast %107 : vector<1x16xf32> to vector<8x16xf32>
    %109 = arith.addf %106, %108 : vector<8x16xf32>
    %cst_62 = arith.constant 0.000000e+00 : f32
    %110 = vector.broadcast %cst_62 : f32 to vector<8x16xf32>
    %111 = arith.maximumf %109, %110 : vector<8x16xf32>
    %c0_63 = arith.constant 0 : index
    %c0_64 = arith.constant 0 : index
    %112 = vector.load %arg21[%c0_63, %c0_64] : memref<8x16xf32, #tpu.memory_space<vmem>>, vector<8x16xf32>
    tpu.vector_store %arg21[%c0_63, %c0_64], %111 {strides = array<i32>} : memref<8x16xf32, #tpu.memory_space<vmem>>, vector<8x16xf32>,
    return
  }
}

</mosaic_0001>

<bundles_post_ra>
// kernel: gnn_forward.1
= control target key start
LH: loop header
LB: loop body
LE: loop exit
PB: predicated region body
PF: predicated region fallthrough
CT: control target
= control target key end

     0   :  { %s3009_s0 = inlined_call_operand.vmem [shape: f32[8,32], index: 0, kind: input, shape index: {}]   ;;  %s3010_s1 = inlined_call_operand.vmem [shape: f32[8,16], index: 1, kind: input, shape index: {}]   ;;  %s3011_s2 = inlined_call_operand.vmem [shape: f32[64,16], index: 2, kind: input, shape index: {}]   ;;  %s3012_s3 = inlined_call_operand.vmem [shape: f32[32,32], index: 3, kind: input, shape index: {}]   ;;  %s3013_s4 = inlined_call_operand.vmem [shape: f32[16,32], index: 4, kind: input, shape index: {}]   ;;  %s3014_s5 = inlined_call_operand.vmem [shape: f32[32,32], index: 5, kind: input, shape index: {}]   ;;  %s3015_s6 = inlined_call_operand.vmem [shape: f32[1,32], index: 6, kind: input, shape index: {}]   ;;  %s3016_s7 = inlined_call_operand.vmem [shape: f32[16,16], index: 7, kind: input, shape index: {}]   ;;  %s3017_s8 = inlined_call_operand.vmem [shape: f32[16,16], index: 8, kind: input, shape index: {}]   ;;  %s3018_s9 = inlined_call_operand.vmem [shape: f32[1,16], index: 9, kind: input, shape index: {}]   ;;  %s3019_s10 = inlined_call_operand.vmem [shape: f32[1,32], index: 10, kind: input, shape index: {}]   ;;  %s3020_s11 = inlined_call_operand.vmem [shape: f32[1,16], index: 11, kind: input, shape index: {}]   ;;  %s3021_s12 = inlined_call_operand.<no memory space> [shape: f32[1], index: 12, kind: input, shape index: {}]   ;;  %s3022_s13 = inlined_call_operand.<no memory space> [shape: f32[1], index: 13, kind: input, shape index: {}]   ;;  %s3023_s14 = inlined_call_operand.vmem [shape: f32[32,32], index: 14, kind: input, shape index: {}]   ;;  %s3024_s15 = inlined_call_operand.vmem [shape: f32[32,32], index: 15, kind: input, shape index: {}]   ;;  %s3025_s16 = inlined_call_operand.vmem [shape: f32[1,32], index: 16, kind: input, shape index: {}]   ;;  %s3026_s17 = inlined_call_operand.vmem [shape: f32[16,16], index: 17, kind: input, shape index: {}]   ;;  %s3027_s18 = inlined_call_operand.vmem [shape: f32[16,16], index: 18, kind: input, shape index: {}]   ;;  %s3028_s19 = inlined_call_operand.vmem [shape: f32[1,16], index: 19, kind: input, shape index: {}]   ;;  %s3029_s20 = inlined_call_operand.hbm [shape: f32[8,32], index: 20, kind: output, shape index: {0}]   ;;  %s3030_s21 = inlined_call_operand.hbm [shape: f32[8,16], index: 21, kind: output, shape index: {1}]  }
   0x1   :  { %3037 = sst [smem:[#allocation10_spill]] %s3009_s0 }
   0x2   :  { %3038 = sst [smem:[#allocation11_spill]] %s3010_s1 }
   0x3   :  { %3039 = sst [smem:[#allocation12_spill]] %s3011_s2 }
   0x4   :  { %3040 = sst [smem:[#allocation13_spill]] %s3012_s3 }
   0x5   :  { %3041 = sst [smem:[#allocation14_spill]] %s3013_s4 }
   0x6   :  { %3042 = sst [smem:[#allocation15_spill]] %s3014_s5 }
   0x7   :  { %29 = vsyncpa [#allocation5], 0  ;;  %s3043_s26 = sld [smem:[#allocation13_spill]]  ;;  %v2265_v2 = vmov 0.0   ;;  %vm77_vm0 = vcmask 261120   ;;  %vm2266_vm1 = vmmov 0  }
   0x8   :  { %s3044_s28 = sld [smem:[#allocation15_spill]]  ;;  %2082 = vmatprep.subr.mxu0 %v2265_v2  ;;  %2093 = vmatprep.subr.mxu1 %v2265_v2 }
   0x9   :  { %s3045_s0 = sld [smem:[#allocation10_spill]]  ;;  %2090 = vmatprep.mubr.msk.f32.mxu0 %vm2266_vm1, %v2265_v2 }
   0xa   :  { %s3046_s30 = sld [smem:[#allocation14_spill]] }
   0xd   :  { %v76_v0 = vld [vmem:[%s3043_s26 + $0x18] sm:$0xff]  ;;  %v75_v3 = vld [vmem:[%s3043_s26 + $0x10] sm:$0xff]  ;;  %v74_v5 = vld [vmem:[%s3043_s26 + $0x8] sm:$0xff] }
   0xe   :  { %v154_v1 = vld [vmem:[%s3044_s28 + $0x18] sm:$0xff]  ;;  %v153_v4 = vld [vmem:[%s3044_s28 + $0x10] sm:$0xff]  ;;  %2083 = vmatpush3.msra.mxu0 %v76_v0  ;;  %v152_v6 = vld [vmem:[%s3044_s28 + $0x8] sm:$0xff] }
   0xf   :  { %2094 = vmatpush3.msra.mxu1 %v154_v1  ;;  %2084 = vmatprep.subr.mxu0 %v2265_v2  ;;  %v73_v7 = vld [vmem:[%s3043_s26] sm:$0xff] }
  0x10   :  { %2095 = vmatprep.subr.mxu1 %v2265_v2  ;;  %2085 = vmatpush3.msra.mxu0 %v75_v3  ;;  %v151_v8 = vld [vmem:[%s3044_s28] sm:$0xff]  ;;  %v234_v10 = vld [vmem:[%s3046_s30 + $0x8] sm:$0xff] }
  0x11   :  { %2096 = vmatpush3.msra.mxu1 %v153_v4  ;;  %2086 = vmatprep.subr.mxu0 %v2265_v2  ;;  %v71_v9 = vld [vmem:[%s3045_s0] sm:$0xff] }
  0x12   :  { %2097 = vmatprep.subr.mxu1 %v2265_v2  ;;  %2087 = vmatpush3.msra.mxu0 %v74_v5 }
  0x13   :  { %2098 = vmatpush3.msra.mxu1 %v152_v6  ;;  %2088 = vmatprep.subr.mxu0 %v2265_v2 }
  0x14   :  { %2099 = vmatprep.subr.mxu1 %v2265_v2  ;;  %2089 = vmatpush3.msra.mxu0 %v73_v7 }
  0x15   :  { %30 = vsyncpa [#allocation7], 0  ;;  %2100 = vmatpush3.msra.mxu1 %v151_v8  ;;  %2101 = vmatprep.mubr.msk.f32.mxu1 %vm2266_vm1, %v2265_v2  ;;  %v495_v11 = vld [vmem:[%s3016_s7 + $0x8] sm:$0xff]  ;;  %v233_v12 = vld [vmem:[%s3046_s30] sm:$0xff]  ;;  %s3047_s2 = sld [smem:[#allocation12_spill]]  ;;  %vm235_vm2 = vcmask 130048   ;;  %v370_v27 = vlaneseq }
  0x16   :  { %2091 = vmatmul.mubr.msk.f32.vlgmr.msra.gmra.mxu0 %vm77_vm0, %v71_v9  ;;  %2102 = vmatmul.mubr.msk.f32.vlgmr.msra.gmra.mxu1 %vm77_vm0, %v71_v9  ;;  %v494_v14 = vld [vmem:[%s3016_s7] sm:$0xff]  ;;  %s3048_s30 = sld [smem:[#allocation11_spill]]  ;;  %v570_v18 = vld [vmem:[%s3017_s8 + $0x8] sm:$0xff]  ;;  %v2267_v25 = vmov 1966171168   ;;  %vm950_vm6 = vcmask 1041409  }
  0x17   :  { %2104 = vmatprep.subr.mxu0 %v234_v10  ;;  %2120 = vmatprep.subr.mxu1 %v2265_v2  ;;  %v569_v19 = vld [vmem:[%s3017_s8] sm:$0xff]  ;;  %v368_v26 = vunpack.c.l.s4 %v2267_v25  ;;  %v2493_v29 = vshrl.u32 %v370_v27, 7  ;;  %vm952_vm8 = vcmask 1042434   ;;  %vm954_vm9 = vcmask 1043459   ;;  %s2270_s28 = smov [#allocation6]  }
  0x18   :  { %2105 = vmatpush3.msra.mxu0 %v234_v10  ;;  %2121 = vmatpush3.msra.mxu1 %v495_v11  ;;  %v2519_v62 = vld [vmem:[%s3015_s6] ss:$0 sm:$0xff]  ;;  %vm956_vm12 = vcmask 1044484   ;;  %vm958_vm13 = vcmask 1045509   ;;  %s2003_s5 = sshll.u32 %s2270_s28, 4  ;;  %s2004_s5 = int_to_ptr.vmem [resolvable:$true] %s2003_s5 }
  0x19   :  { %2106 = vmatprep.subr.mxu0 %v233_v12  ;;  %2122 = vmatprep.subr.mxu1 %v2265_v2  ;;  %v369_v28 = vunpack.c.0.s8 %v368_v26  ;;  %v2501_v42 = vsub.s32 0, %v2493_v29 }
  0x1a   :  { %2107 = vmatpush3.msra.mxu0 %v233_v12  ;;  %2123 = vmatpush3.msra.mxu1 %v494_v14 }
  0x1b   :  { %v225_v13 = vld [vmem:[%s3047_s2] sm:$0xff]  ;;  %v226_v15 = vld [vmem:[%s3047_s2 + $0x8] sm:$0xff]  ;;  %v227_v17 = vld [vmem:[%s3047_s2 + $0x10] sm:$0xff]  ;;  %2124 = vmatprep.mubr.msk.f32.mxu1 %vm2266_vm1, %v2265_v2  ;;  %2127 = vmatprep.subr.mxu1 %v2265_v2  ;;  %v372_v30 = vsub.s32 %v369_v28, %v2493_v29 }
  0x1c   :  { %v72_v16 = vld [vmem:[%s3048_s30] sm:$0xff]  ;;  %2108 = vmatprep.mubr.msk.f32.mxu0 %vm235_vm2, %v225_v13  ;;  %v228_v20 = vld [vmem:[%s3047_s2 + $0x18] sm:$0xff]  ;;  %2139 = vmatprep.subr.mxu0 %v2265_v2  ;;  %v230_v22 = vld [vmem:[%s3047_s2 + $0x28] sm:$0xff] }
  0x1d   :  { %2109 = vmatmul.mubr.msk.f32.vlgmr.msra.gmra.mxu0 %vm235_vm2, %v226_v15  ;;  %2125 = vmatmul.mubr.msk.f32.vlgmr.msra.gmra.mxu1 %vm235_vm2, %v72_v16  ;;  %v229_v21 = vld [vmem:[%s3047_s2 + $0x20] sm:$0xff]  ;;  %v231_v23 = vld [vmem:[%s3047_s2 + $0x30] sm:$0xff]  ;;  %v232_v24 = vld [vmem:[%s3047_s2 + $0x38] sm:$0xff] }
  0x1e   :  { %2111 = vmatprep.mubr.msk.f32.mxu0 %vm235_vm2, %v227_v17  ;;  %2128 = vmatpush3.msra.mxu1 %v570_v18 }
  0x1f   :  { %2131 = vmatprep.mubr.msk.f32.mxu1 %vm2266_vm1, %v2265_v2  ;;  %2129 = vmatprep.subr.mxu1 %v2265_v2 }
  0x20   :  { %2130 = vmatpush3.msra.mxu1 %v569_v19 }
  0x21   :  { %2112 = vmatmul.mubr.msk.f32.gmra.mxu0 %vm235_vm2, %v228_v20  ;;  %2132 = vmatmul.mubr.msk.f32.vlgmr.msra.gmra.mxu1 %vm235_vm2, %v72_v16 }
  0x22   :  { %2114 = vmatprep.mubr.msk.f32.mxu0 %vm235_vm2, %v229_v21  ;;  %2134 = vmatprep.subr.mxu1 %v2265_v2 }
  0x23   :  { %2136 = vmatprep.mubr.msk.f32.mxu1 %vm2266_vm1, %v2265_v2  ;;  %2135 = vmatpush3.msra.mxu1 %v72_v16 }
  0x24   :  { %2150 = vmatprep.subr.mxu1 %v2265_v2 }
  0x25   :  { %2115 = vmatmul.mubr.msk.f32.gmra.mxu0 %vm235_vm2, %v230_v22 }
  0x26   :  { %2117 = vmatprep.mubr.msk.f32.mxu0 %vm235_vm2, %v231_v23 }
  0x29   :  { %2118 = vmatmul.mubr.msk.f32.gmra.mxu0 %vm235_vm2, %v232_v24 }
  0x2a   :  { %2147 = vmatprep.mubr.msk.f32.mxu0 %vm2266_vm1, %v2265_v2 }
  0xd6   :  { %v2496_v31 = vpop.f32.mrf.mxu0  ;;  %v221_v32 = vpop.f32.mrf.mxu1 }
  0xd7   :  { %v366_v33 = vcombine.high %v221_v32, %v221_v32  ;;  %v373_v34 = vrot.slane %v221_v32, %v372_v30 }
  0xd8   :  { %v2092_v35 = vpop.f32.mrf.mxu0  ;;  %v2103_v36 = vpop.f32.mrf.mxu1 }
  0xd9   :  { %v380_v37 = vrot.slane %v366_v33, %v372_v30  ;;  %v381_v38 = vcombine.high %v373_v34, %v373_v34  ;;  %v389_v54 = vrot.slane %v373_v34, %v372_v30  ;;  %v2028_v35 = vld [vmem:[%s3018_s9] ss:$0 sm:$0xff] }
  0xdb   :  { %v382_v39 = vcombine.high %v380_v37, %v380_v37  ;;  %v2498_v40 = vrot.slane %v380_v37, %v372_v30  ;;  %v403_v41 = vrot.slane %v381_v38, %v372_v30  ;;  %v411_v7 = vcombine.high %v389_v54, %v389_v54 }
  0xdc   :  { %v418_v12 = vrot.slane %v389_v54, %v2501_v42  ;;  %v2030_v54 = vld [vmem:[%s3020_s11] ss:$0 sm:$0xff] }
  0xdd   :  { %v2110_v43 = vpop.f32.mrf.mxu0  ;;  %v2503_v44 = vpop.f32.mrf.mxu1  ;;  %v422_v45 = vrot.slane %v403_v41, %v2501_v42  ;;  %v413_v46 = vcombine.high %v403_v41, %v403_v41  ;;  %v410_v47 = vrot.slane %v382_v39, %v372_v30  ;;  %v412_v50 = vcombine.high %v2498_v40, %v2498_v40 }
  0xde   :  { %v426_v25 = vrot.slane %v411_v7, %v2501_v42  ;;  %v455_v28 = vadd.f32 %v418_v12, %v2496_v31  ;;  %v434_v36 = vrot.slane %v2498_v40, %v2501_v42 }
  0xdf   :  { %v2506_v48 = vpop.f32.mrf.mxu0  ;;  %v2126_v49 = vpop.f32.mrf.mxu1  ;;  %v456_v51 = vadd.f32 %v422_v45, %v2496_v31  ;;  %v430_v52 = vrot.slane %v413_v46, %v2501_v42  ;;  %v438_v53 = vrot.slane %v410_v47, %v2501_v42  ;;  %v442_v56 = vrot.slane %v412_v50, %v2501_v42 }
  0xe0   :  { %v414_v61 = vcombine.high %v410_v47, %v410_v47 }
  0xe1   :  { %v2113_v55 = vpop.f32.mrf.mxu0  ;;  %v464_v57 = vadd.f32 %v2110_v43, %v456_v51  ;;  %v458_v58 = vadd.f32 %v430_v52, %v2496_v31  ;;  %v637_v59 = vpop.f32.mrf.mxu1  ;;  %v460_v60 = vadd.f32 %v438_v53, %v2496_v31  ;;  %v461_v6 = vadd.f32 %v442_v56, %v2496_v31 }
  0xe2   :  { %v642_v63 = vcombine.high %v637_v59, %v637_v59  ;;  %v649_v0 = vrot.slane %v637_v59, %v372_v30  ;;  %v446_v15 = vrot.slane %v414_v61, %v2501_v42  ;;  %v457_v61 = vadd.f32 %v426_v25, %v2496_v31 }
  0xe3   :  { %v2521_v1 = vpop.f32.mrf.mxu0  ;;  %v2524_v3 = vadd.f32 %v2519_v62, %v464_v57  ;;  %v466_v4 = vadd.f32 %v2113_v55, %v458_v58  ;;  %v2133_v5 = vpop.f32.mrf.mxu1 }
  0xe4   :  { %v656_v8 = vrot.slane %v642_v63, %v372_v30  ;;  %v657_v9 = vcombine.high %v649_v0, %v649_v0  ;;  %v665_v10 = vrot.slane %v649_v0, %v372_v30  ;;  %v462_v37 = vadd.f32 %v446_v15, %v2496_v31 }
  0xe5   :  { %v2116_v11 = vpop.f32.mrf.mxu0  ;;  %v2529_v13 = vadd.f32 %v2519_v62, %v466_v4  ;;  %v487_v5 = vmax.f32 %v2524_v3, 0.0 }
  0xe6   :  { %v468_v14 = vadd.f32 %v2116_v11, %v460_v60  ;;  %v658_v16 = vcombine.high %v656_v8, %v656_v8  ;;  %v672_v17 = vrot.slane %v656_v8, %v372_v30  ;;  %v679_v18 = vrot.slane %v657_v9, %v372_v30 }
  0xe7   :  { %v687_v19 = vcombine.high %v665_v10, %v665_v10  ;;  %v2532_v20 = vpop.f32.mrf.mxu0  ;;  %v694_v21 = vrot.slane %v665_v10, %v2501_v42  ;;  %v489_v7 = vmax.f32 %v2529_v13, 0.0 }
  0xe8   :  { %v2536_v22 = vadd.f32 %v2519_v62, %v468_v14  ;;  %v689_v23 = vcombine.high %v679_v18, %v679_v18  ;;  %v698_v24 = vrot.slane %v679_v18, %v2501_v42  ;;  %v686_v32 = vrot.slane %v658_v16, %v372_v30 }
  0xe9   :  { %v2119_v26 = vpop.f32.mrf.mxu0  ;;  %v702_v33 = vrot.slane %v687_v19, %v2501_v42  ;;  %v710_v34 = vrot.slane %v672_v17, %v2501_v42  ;;  %v731_v39 = vadd.f32 %v694_v21, %v2503_v44  ;;  %v688_v43 = vcombine.high %v672_v17, %v672_v17 }
  0xea   :  { %v732_v41 = vadd.f32 %v698_v24, %v2503_v44  ;;  %v706_v46 = vrot.slane %v689_v23, %v2501_v42  ;;  %v470_v47 = vadd.f32 %v2119_v26, %v462_v37  ;;  %v690_v52 = vcombine.high %v686_v32, %v686_v32  ;;  %v2029_v37 = vld [vmem:[%s3019_s10] ss:$0 sm:$0xff] }
  0xeb   :  { %v356_v38 = vpop.f32.mrf.mxu0  ;;  %v733_v45 = vadd.f32 %v702_v33, %v2503_v44  ;;  %v746_v49 = vadd.f32 %v2028_v35, %v731_v39  ;;  %v735_v51 = vadd.f32 %v710_v34, %v2503_v44  ;;  %v714_v4 = vrot.slane %v686_v32, %v2501_v42 }
  0xec   :  { %v469_v30 = vadd.f32 %v461_v6, %v356_v38  ;;  %v747_v50 = vadd.f32 %v2028_v35, %v732_v41  ;;  %v734_v56 = vadd.f32 %v706_v46, %v2503_v44  ;;  %v2562_v57 = vadd.f32 %v2519_v62, %v470_v47 }
  0xed   :  { %v748_v55 = vadd.f32 %v2028_v35, %v733_v45  ;;  %v754_v58 = vmax.f32 %v746_v49, 0.0  ;;  %v750_v60 = vadd.f32 %v2028_v35, %v735_v51  ;;  %v463_v6 = vadd.f32 %v455_v28, %v2506_v48 }
  0xee   :  { %v2555_v53 = vadd.f32 %v2519_v62, %v469_v30  ;;  %v755_v59 = vmax.f32 %v747_v50, 0.0  ;;  %v749_v0 = vadd.f32 %v2028_v35, %v734_v56  ;;  %v736_v11 = vadd.f32 %v714_v4, %v2503_v44 }
  0xef   :  { %v756_v63 = vmax.f32 %v748_v55, 0.0  ;;  %v842_v8 = vmul.f32 %v2030_v54, %v754_v58  ;;  %v718_v12 = vrot.slane %v688_v43, %v2501_v42  ;;  %v758_v16 = vmax.f32 %v750_v60, 0.0 }
  0xf0   :  { %v757_v10 = vmax.f32 %v749_v0, 0.0  ;;  %v843_v15 = vmul.f32 %v2030_v54, %v755_v59  ;;  %v722_v17 = vrot.slane %v690_v52, %v2501_v42  ;;  %v751_v48 = vadd.f32 %v2028_v35, %v736_v11 }
  0xf1   :  { %v844_v9 = vmul.f32 %v2030_v54, %v756_v63  ;;  %v850_v14 = vsel %vm235_vm2, %v842_v8, 0.0  ;;  %v737_v21 = vadd.f32 %v718_v12, %v2503_v44  ;;  %v2576_v23 = vadd.f32 %v2519_v62, %v463_v6 }
  0xf2   :  { %851 = vadd.xlane.f32.xlu0 %v850_v14  ;;  %v845_v19 = vmul.f32 %v2030_v54, %v757_v10  ;;  %v491_v24 = vmax.f32 %v2536_v22, 0.0  ;;  %v493_v25 = vmax.f32 %v2562_v57, 0.0  ;;  %v738_v26 = vadd.f32 %v722_v17, %v2503_v44 }
  0xf3   :  { %v856_v18 = vsel %vm235_vm2, %v844_v9, 0.0  ;;  %v465_v28 = vadd.f32 %v457_v61, %v2521_v1  ;;  %v492_v32 = vmax.f32 %v2555_v53, 0.0  ;;  %v759_v33 = vmax.f32 %v751_v48, 0.0 }
  0xf4   :  { %857 = vadd.xlane.f32.xlu1 %v856_v18  ;;  %v752_v34 = vadd.f32 %v2028_v35, %v737_v21  ;;  %v853_v38 = vsel %vm235_vm2, %v843_v15, 0.0  ;;  %v846_v39 = vmul.f32 %v2030_v54, %v758_v16  ;;  %v753_v41 = vadd.f32 %v2028_v35, %v738_v26 }
  0xf5   :  { %v2589_v43 = vmul.f32 %v2029_v37, %v487_v5  ;;  %v859_v44 = vsel %vm235_vm2, %v845_v19, 0.0  ;;  %v847_v1 = vmul.f32 %v2030_v54, %v759_v33  ;;  %v2594_v45 = vmul.f32 %v2029_v37, %v489_v7 }
  0xf6   :  { %854 = vadd.xlane.f32.xlu0 %v853_v38  ;;  %v760_v30 = vmax.f32 %v752_v34, 0.0  ;;  %v761_v46 = vmax.f32 %v753_v41, 0.0  ;;  %v2598_v47 = vmul.f32 %v2029_v37, %v491_v24  ;;  %v2602_v35 = vmul.f32 %v2029_v37, %v493_v25 }
  0xf7   :  { %v459_v49 = vadd.f32 %v434_v36, %v2496_v31  ;;  %v2610_v50 = vmul.f32 %v2029_v37, %v492_v32  ;;  %v486_v51 = vmax.f32 %v2576_v23, 0.0  ;;  %v862_v52 = vsel %vm235_vm2, %v846_v39, 0.0 }
  0xf8   :  { %860 = vadd.xlane.f32.xlu1 %v859_v44  ;;  %v848_v55 = vmul.f32 %v2030_v54, %v760_v30  ;;  %v2615_v56 = vadd.f32 %v2519_v62, %v465_v28  ;;  %v865_v59 = vsel %vm235_vm2, %v847_v1, 0.0  ;;  %v849_v60 = vmul.f32 %v2030_v54, %v761_v46 }
  0xf9   :  { %v467_v58 = vadd.f32 %v459_v49, %v2532_v20  ;;  %v769_v63 = vmul.f32 %v2029_v37, %v486_v51  ;;  %v875_v8 = vstv %s3022_s13  ;;  %v917_v12 = vand.u32 127, %v370_v27 }
  0xfa   :  { %863 = vadd.xlane.f32.xlu0 %v862_v52  ;;  %v868_v31 = vsel %vm235_vm2, %v848_v55, 0.0  ;;  %v488_v40 = vmax.f32 %v2615_v56, 0.0  ;;  %v871_v61 = vsel %vm235_vm2, %v849_v60, 0.0 }
  0xfb   :  { %v2622_v36 = vadd.f32 %v2519_v62, %v467_v58  ;;  %v777_v0 = vsel %vm77_vm0, %v769_v63, 0.0  ;;  %v2640_v48 = vsub.s32 %v917_v12, %v2493_v29 }
  0xfc   :  { %866 = vadd.xlane.f32.xlu1 %v865_v59  ;;  %v771_v54 = vmul.f32 %v2029_v37, %v488_v40 }
  0xfd   :  { %v490_v20 = vmax.f32 %v2622_v36, 0.0 }
  0xfe   :  { %869 = vadd.xlane.f32.xlu0 %v868_v31  ;;  %v783_v4 = vsel %vm77_vm0, %v771_v54, 0.0 }
  0xff   :  { %v773_v62 = vmul.f32 %v2029_v37, %v490_v20 }
 0x100   :  { %872 = vadd.xlane.f32.xlu1 %v871_v61 }
 0x101   :  { %v789_v6 = vsel %vm77_vm0, %v773_v62, 0.0 }
 0x104   :  { %778 = vadd.xlane.f32.xlu1 %v777_v0 }
 0x108   :  { %784 = vadd.xlane.f32.xlu1 %v783_v4 }
 0x10c   :  { %790 = vadd.xlane.f32.xlu1 %v789_v6 }
 0x17b   :  { %v852_v9 = vpop.xlane.xlu0 %851 }
 0x17c   :  { %v876_v10 = vadd.f32 %v875_v8, %v852_v9 }
 0x17d   :  { %v858_v11 = vpop.xlane.xlu1 %857 }
 0x17e   :  { %v878_v14 = vadd.f32 %v875_v8, %v858_v11  ;;  %v892_v15 = vmul.f32 0.2, %v876_v10  ;;  %vm884_vm3 = vcmp.ge.f32.partialorder %v876_v10, 0.0 }
 0x17f   :  { %v855_v17 = vpop.xlane.xlu0 %854 }
 0x180   :  { %v894_v16 = vmul.f32 0.2, %v878_v14  ;;  %vm886_vm4 = vcmp.ge.f32.partialorder %v878_v14, 0.0  ;;  %v877_v18 = vadd.f32 %v875_v8, %v855_v17  ;;  %v2642_v26 = vsel %vm884_vm3, %v876_v10, %v892_v15 }
 0x181   :  { %v861_v19 = vpop.xlane.xlu1 %860  ;;  %v1170_v41 = vrot.slane %v2642_v26, %v2640_v48  ;;  %vm960_vm3 = vcmask 1046534  }
 0x182   :  { %v879_v21 = vadd.f32 %v875_v8, %v861_v19  ;;  %vm885_vm5 = vcmp.ge.f32.partialorder %v877_v18, 0.0  ;;  %v893_v28 = vmul.f32 0.2, %v877_v18  ;;  %v2644_v33 = vsel %vm886_vm4, %v878_v14, %v894_v16 }
 0x183   :  { %v864_v34 = vpop.xlane.xlu0 %863  ;;  %v1178_v46 = vrot.slane %v2644_v33, %v2640_v48  ;;  %vm962_vm4 = vcmask 1047559  }
 0x184   :  { %vm887_vm7 = vcmp.ge.f32.partialorder %v879_v21, 0.0  ;;  %v895_v27 = vmul.f32 0.2, %v879_v21  ;;  %v2646_v37 = vsel %vm885_vm5, %v877_v18, %v893_v28  ;;  %v880_v38 = vadd.f32 %v875_v8, %v864_v34 }
 0x185   :  { %v867_v39 = vpop.xlane.xlu1 %866  ;;  %v1174_v44 = vrot.slane %v2646_v37, %v2640_v48  ;;  %vm965_vm5 = vcmask 64512   ;;  %v786_v28 = vsel %vm77_vm0, %v2594_v45, 0.0  ;;  %v2268_v34 = vmov 0  }
 0x186   :  { %v2652_v1 = vsel %vm887_vm7, %v879_v21, %v895_v27  ;;  %v881_v30 = vadd.f32 %v875_v8, %v867_v39  ;;  %vm888_vm10 = vcmp.ge.f32.partialorder %v880_v38, 0.0  ;;  %v896_v52 = vmul.f32 0.2, %v880_v38  ;;  %2182 = vset.pattern.permute.xlu0 %v2268_v34  ;;  %2181 = vset.pattern.permute.xlu1 %v2268_v34 }
 0x187   :  { %v1182_v49 = vrot.slane %v2652_v1, %v2640_v48  ;;  %v1199_v55 = vsel %vm950_vm6, %v1174_v44, %v1170_v41  ;;  %v870_v59 = vpop.xlane.xlu0 %869  ;;  %v780_v21 = vsel %vm77_vm0, %v2589_v43, 0.0  ;;  %v792_v27 = vsel %vm77_vm0, %v2598_v47, 0.0 }
 0x188   :  { %vm889_vm11 = vcmp.ge.f32.partialorder %v881_v30, 0.0  ;;  %v897_v58 = vmul.f32 0.2, %v881_v30  ;;  %v904_v60 = vsel %vm888_vm10, %v880_v38, %v896_v52  ;;  %v882_v31 = vadd.f32 %v875_v8, %v870_v59 }
 0x189   :  { %v873_v61 = vpop.xlane.xlu1 %872  ;;  %v1200_v63 = vsel %vm952_vm8, %v1178_v46, %v1199_v55  ;;  %v1186_v0 = vrot.slane %v904_v60, %v2640_v48  ;;  %v2677_v38 = vsub.s32 1, %v2493_v29  ;;  %v2680_v39 = vsub.s32 2, %v2493_v29 }
 0x18a   :  { %v905_v54 = vsel %vm889_vm11, %v881_v30, %v897_v58  ;;  %v883_v4 = vadd.f32 %v875_v8, %v873_v61  ;;  %v1201_v62 = vsel %vm954_vm9, %v1182_v49, %v1200_v63  ;;  %vm890_vm14 = vcmp.ge.f32.partialorder %v882_v31, 0.0 }
 0x18b   :  { %v1190_v6 = vrot.slane %v905_v54, %v2640_v48  ;;  %v898_v9 = vmul.f32 0.2, %v882_v31  ;;  %v1202_v11 = vsel %vm956_vm12, %v1186_v0, %v1201_v62  ;;  %v2683_v43 = vsub.s32 3, %v2493_v29 }
 0x18c   :  { %vm891_vm15 = vcmp.ge.f32.partialorder %v883_v4, 0.0  ;;  %v899_v10 = vmul.f32 0.2, %v883_v4  ;;  %v2686_v41 = vsub.s32 4, %v2493_v29  ;;  %v2689_v45 = vsub.s32 5, %v2493_v29 }
 0x18d   :  { %v906_v12 = vsel %vm890_vm14, %v882_v31, %v898_v9  ;;  %v1203_v14 = vsel %vm958_vm13, %v1190_v6, %v1202_v11  ;;  %v2696_v52 = vsub.s32 6, %v2493_v29  ;;  %v2703_v61 = vsub.s32 7, %v2493_v29  ;;  %v779_v34 = vpop.xlane.xlu1 %778 }
 0x18e   :  { %v1194_v15 = vrot.slane %v906_v12, %v2640_v48  ;;  %v907_v16 = vsel %vm891_vm15, %v883_v4, %v899_v10 }
 0x18f   :  { %v1198_v8 = vrot.slane %v907_v16, %v2640_v48 }
 0x190   :  { %v1204_v17 = vsel %vm960_vm3, %v1194_v15, %v1203_v14 }
 0x191   :  { %v1205_v18 = vsel %vm962_vm4, %v1198_v8, %v1204_v17 }
 0x192   :  { %v1207_v19 = vsel %vm965_vm5, %v1205_v18, -inf }
 0x193   :  { %1208 = vmax.xlane.f32.xlu0 %v1207_v19 }
 0x197   :  { %781 = vadd.xlane.f32.xlu0 %v780_v21 }
 0x19b   :  { %787 = vadd.xlane.f32.xlu0 %v786_v28  ;;  %v798_v28 = vsel %vm77_vm0, %v2602_v35, 0.0 }
 0x19f   :  { %793 = vadd.xlane.f32.xlu0 %v792_v27  ;;  %v795_v27 = vsel %vm77_vm0, %v2610_v50, 0.0 }
 0x21c   :  { %v1209_v47 = vpop.xlane.xlu0 %1208 }
 0x21d   :  { %v1214_v44 = vrot.slane %v1209_v47, %v2501_v42  ;;  %v1218_v30 = vrot.slane %v1209_v47, %v2677_v38  ;;  %v1222_v46 = vrot.slane %v1209_v47, %v2680_v39  ;;  %v1226_v49 = vrot.slane %v1209_v47, %v2683_v43 }
 0x21e   :  { %v1230_v55 = vrot.slane %v1209_v47, %v2686_v41  ;;  %v1234_v63 = vrot.slane %v1209_v47, %v2689_v45  ;;  %v1238_v6 = vrot.slane %v1209_v47, %v2696_v52 }
 0x21f   :  { %v1251_v58 = vsub.f32 %v2642_v26, %v1214_v44  ;;  %v1252_v59 = vsub.f32 %v2646_v37, %v1218_v30  ;;  %v1253_v31 = vsub.f32 %v2644_v33, %v1222_v46  ;;  %v1254_v0 = vsub.f32 %v2652_v1, %v1226_v49  ;;  %v785_v44 = vpop.xlane.xlu1 %784 }
 0x220   :  { %v1255_v9 = vsub.f32 %v904_v60, %v1230_v55  ;;  %v1242_v26 = vrot.slane %v1209_v47, %v2703_v61  ;;  %v1256_v11 = vsub.f32 %v905_v54, %v1234_v63  ;;  %v1257_v33 = vsub.f32 %v906_v12, %v1238_v6  ;;  %v782_v47 = vpop.xlane.xlu0 %781 }
 0x221   :  { %v1259_v4 = vmul.f32 1.442695, %v1251_v58  ;;  %v1261_v62 = vmul.f32 1.442695, %v1252_v59  ;;  %v1263_v10 = vmul.f32 1.442695, %v1253_v31 }
 0x222   :  { %v1265_v37 = vmul.f32 1.442695, %v1254_v0  ;;  %v1267_v29 = vmul.f32 1.442695, %v1255_v9  ;;  %v1258_v14 = vsub.f32 %v907_v16, %v1242_v26  ;;  %v1269_v15 = vmul.f32 1.442695, %v1256_v11 }
 0x223   :  { %2183 = vpow2.f32 %v1259_v4  ;;  %v1271_v1 = vmul.f32 1.442695, %v1257_v33  ;;  %v791_v46 = vpop.xlane.xlu1 %790 }
 0x224   :  { %2185 = vpow2.f32 %v1261_v62  ;;  %v1273_v8 = vmul.f32 1.442695, %v1258_v14  ;;  %v788_v30 = vpop.xlane.xlu0 %787 }
 0x225   :  { %2187 = vpow2.f32 %v1263_v10 }
 0x226   :  { %2189 = vpow2.f32 %v1265_v37 }
 0x227   :  { %2191 = vpow2.f32 %v1267_v29 }
 0x228   :  { %2193 = vpow2.f32 %v1269_v15  ;;  %v794_v49 = vpop.xlane.xlu0 %793 }
 0x229   :  { %2195 = vpow2.f32 %v1271_v1 }
 0x22a   :  { %2197 = vpow2.f32 %v1273_v8 }
 0x230   :  { %v2709_v17 = vpop.eup %2183 }
 0x231   :  { %v2711_v60 = vpop.eup %2185  ;;  %1284 = vperm.xlu1 %2181, %v2709_v17  }
 0x232   :  { %1287 = vperm.xlu0 %2182, %v2711_v60   ;;  %v2715_v54 = vpop.eup %2187 }
 0x233   :  { %v2717_v12 = vpop.eup %2189 }
 0x234   :  { %v2721_v16 = vpop.eup %2191 }
 0x235   :  { %1290 = vperm.xlu1 %2181, %v2715_v54   ;;  %v2723_v18 = vpop.eup %2193 }
 0x236   :  { %1293 = vperm.xlu0 %2182, %v2717_v12   ;;  %v2727_v19 = vpop.eup %2195 }
 0x237   :  { %v2729_v21 = vpop.eup %2197 }
 0x239   :  { %1296 = vperm.xlu1 %2181, %v2721_v16  }
 0x23a   :  { %1299 = vperm.xlu0 %2182, %v2723_v18  }
 0x23d   :  { %1302 = vperm.xlu1 %2181, %v2727_v19  }
 0x23e   :  { %1305 = vperm.xlu0 %2182, %v2729_v21  }
 0x25d   :  { %799 = vadd.xlane.f32.xlu0 %v798_v28 }
 0x261   :  { %796 = vadd.xlane.f32.xlu1 %v795_v27 }
 0x2ac   :  { %v1285_v55 = vpop.permute.xlu1 %1284 }
 0x2ad   :  { %v1288_v58 = vpop.permute.xlu0 %1287  ;;  %v1310_v31 = vrot.slane %v1285_v55, %v2640_v48  ;;  %v802_v55 = vstv %s3021_s12 }
 0x2ae   :  { %v1314_v59 = vrot.slane %v1288_v58, %v2640_v48  ;;  %v804_v58 = vadd.f32 %v802_v55, %v782_v47 }
 0x2b0   :  { %v1291_v63 = vpop.permute.xlu1 %1290  ;;  %v1339_v4 = vsel %vm950_vm6, %v1314_v59, %v1310_v31  ;;  %v803_v59 = vadd.f32 %v802_v55, %v779_v34  ;;  %v820_v31 = vmul.f32 0.2, %v804_v58  ;;  %vm812_vm7 = vcmp.ge.f32.partialorder %v804_v58, 0.0 }
 0x2b1   :  { %v1294_v0 = vpop.permute.xlu0 %1293  ;;  %v1318_v35 = vrot.slane %v1291_v63, %v2640_v48  ;;  %v806_v63 = vadd.f32 %v802_v55, %v788_v30 }
 0x2b2   :  { %v1322_v50 = vrot.slane %v1294_v0, %v2640_v48  ;;  %v819_v0 = vmul.f32 0.2, %v803_v59  ;;  %vm811_vm10 = vcmp.ge.f32.partialorder %v803_v59, 0.0 }
 0x2b3   :  { %v1340_v62 = vsel %vm952_vm8, %v1318_v35, %v1339_v4  ;;  %v805_v35 = vadd.f32 %v802_v55, %v785_v44  ;;  %v2756_v4 = vsel %vm812_vm7, %v804_v58, %v820_v31  ;;  %vm814_vm11 = vcmp.ge.f32.partialorder %v806_v63, 0.0 }
 0x2b4   :  { %v1297_v6 = vpop.permute.xlu1 %1296  ;;  %v1341_v11 = vsel %vm954_vm9, %v1322_v50, %v1340_v62  ;;  %v822_v50 = vmul.f32 0.2, %v806_v63  ;;  %v808_v62 = vadd.f32 %v802_v55, %v794_v49  ;;  %v925_v47 = vrot.slane %v2756_v4, %v2640_v48 }
 0x2b5   :  { %v1300_v9 = vpop.permute.xlu0 %1299  ;;  %v1326_v10 = vrot.slane %v1297_v6, %v2640_v48  ;;  %v2758_v6 = vsel %vm811_vm10, %v803_v59, %v819_v0  ;;  %vm813_vm14 = vcmp.ge.f32.partialorder %v805_v35, 0.0 }
 0x2b6   :  { %v1330_v26 = vrot.slane %v1300_v9, %v2640_v48  ;;  %v821_v9 = vmul.f32 0.2, %v805_v35  ;;  %v921_v34 = vrot.slane %v2758_v6, %v2640_v48  ;;  %v2764_v30 = vsel %vm814_vm11, %v806_v63, %v822_v50 }
 0x2b7   :  { %v1342_v37 = vsel %vm956_vm12, %v1326_v10, %v1341_v11  ;;  %v807_v10 = vadd.f32 %v802_v55, %v791_v46  ;;  %v824_v44 = vmul.f32 0.2, %v808_v62  ;;  %vm816_vm15 = vcmp.ge.f32.partialorder %v808_v62, 0.0 }
 0x2b8   :  { %v1303_v33 = vpop.permute.xlu1 %1302  ;;  %v1343_v1 = vsel %vm958_vm13, %v1330_v26, %v1342_v37  ;;  %v2766_v11 = vsel %vm813_vm14, %v805_v35, %v821_v9  ;;  %v951_v46 = vsel %vm950_vm6, %v925_v47, %v921_v34 }
 0x2b9   :  { %v1306_v29 = vpop.permute.xlu0 %1305  ;;  %v1334_v14 = vrot.slane %v1303_v33, %v2640_v48  ;;  %v823_v37 = vmul.f32 0.2, %v807_v10  ;;  %vm815_vm7 = vcmp.ge.f32.partialorder %v807_v10, 0.0  ;;  %v933_v33 = vrot.slane %v2764_v30, %v2640_v48 }
 0x2ba   :  { %v1338_v15 = vrot.slane %v1306_v29, %v2640_v48  ;;  %v929_v29 = vrot.slane %v2766_v11, %v2640_v48 }
 0x2bb   :  { %v1344_v8 = vsel %vm960_vm3, %v1334_v14, %v1343_v1  ;;  %v2773_v14 = vsel %vm816_vm15, %v808_v62, %v824_v44 }
 0x2bc   :  { %v1345_v28 = vsel %vm962_vm4, %v1338_v15, %v1344_v8  ;;  %v831_v8 = vsel %vm815_vm7, %v807_v10, %v823_v37  ;;  %v941_v58 = vrot.slane %v2773_v14, %v2640_v48 }
 0x2bd   :  { %v1347_v27 = vsel %vm965_vm5, %v1345_v28, 0.0  ;;  %v937_v63 = vrot.slane %v831_v8, %v2640_v48 }
 0x2be   :  { %1348 = vadd.xlane.f32.xlu1 %v1347_v27  ;;  %v953_v27 = vsel %vm952_vm8, %v929_v29, %v951_v46 }
 0x2bf   :  { %v955_v31 = vsel %vm954_vm9, %v933_v33, %v953_v27 }
 0x2c0   :  { %v957_v62 = vsel %vm956_vm12, %v937_v63, %v955_v31 }
 0x2e6   :  { %v800_v26 = vpop.xlane.xlu0 %799 }
 0x2e7   :  { %v810_v49 = vadd.f32 %v802_v55, %v800_v26 }
 0x2e9   :  { %v826_v15 = vmul.f32 0.2, %v810_v49  ;;  %vm818_vm10 = vcmp.ge.f32.partialorder %v810_v49, 0.0 }
 0x2ea   :  { %v797_v1 = vpop.xlane.xlu1 %796 }
 0x2eb   :  { %v809_v28 = vadd.f32 %v802_v55, %v797_v1  ;;  %v834_v0 = vsel %vm818_vm10, %v810_v49, %v826_v15  ;;  %v959_v55 = vsel %vm958_vm13, %v941_v58, %v957_v62 }
 0x2ec   :  { %v949_v9 = vrot.slane %v834_v0, %v2640_v48 }
 0x2ed   :  { %vm817_vm11 = vcmp.ge.f32.partialorder %v809_v28, 0.0  ;;  %v825_v59 = vmul.f32 0.2, %v809_v28 }
 0x2ef   :  { %v833_v35 = vsel %vm817_vm11, %v809_v28, %v825_v59 }
 0x2f0   :  { %v945_v50 = vrot.slane %v833_v35, %v2640_v48 }
 0x2f2   :  { %v961_v10 = vsel %vm960_vm3, %v945_v50, %v959_v55 }
 0x2f3   :  { %v963_v47 = vsel %vm962_vm4, %v949_v9, %v961_v10 }
 0x2f4   :  { %v966_v34 = vsel %vm965_vm5, %v963_v47, -inf }
 0x2f5   :  { %967 = vmax.xlane.f32.xlu1 %v966_v34 }
 0x347   :  { %v1349_v44 = vpop.xlane.xlu1 %1348 }
 0x348   :  { %2199 = vrcp.f32 %v1349_v44 }
 0x355   :  { %v2200_v26 = vpop.eup %2199 }
 0x356   :  { %v1363_v37 = vrot.slane %v2200_v26, %v2680_v39  ;;  %v1355_v49 = vrot.slane %v2200_v26, %v2501_v42  ;;  %v1359_v29 = vrot.slane %v2200_v26, %v2677_v38  ;;  %v1367_v1 = vrot.slane %v2200_v26, %v2683_v43 }
 0x357   :  { %v1371_v27 = vrot.slane %v2200_v26, %v2686_v41  ;;  %v1379_v59 = vrot.slane %v2200_v26, %v2696_v52  ;;  %v1383_v31 = vrot.slane %v2200_v26, %v2703_v61 }
 0x358   :  { %v1394_v46 = vmul.f32 %v2715_v54, %v1363_v37  ;;  %v1392_v33 = vmul.f32 %v2709_v17, %v1355_v49  ;;  %v1393_v15 = vmul.f32 %v2711_v60, %v1359_v29  ;;  %v1395_v28 = vmul.f32 %v2717_v12, %v1367_v1 }
 0x359   :  { %v1396_v58 = vmul.f32 %v2721_v16, %v1371_v27  ;;  %v1375_v54 = vrot.slane %v2200_v26, %v2689_v45  ;;  %v1398_v60 = vmul.f32 %v2727_v19, %v1379_v59  ;;  %v1399_v12 = vmul.f32 %v2729_v21, %v1383_v31 }
 0x35a   :  { %1527 = vperm.xlu0 %2182, %v1394_v46   ;;  %1521 = vperm.xlu1 %2181, %v1392_v33  }
 0x35b   :  { %v1397_v17 = vmul.f32 %v2723_v18, %v1375_v54 }
 0x35e   :  { %1524 = vperm.xlu1 %2181, %v1393_v15  }
 0x362   :  { %1530 = vperm.xlu1 %2181, %v1395_v28  }
 0x366   :  { %1533 = vperm.xlu1 %2181, %v1396_v58  }
 0x36a   :  { %1536 = vperm.xlu1 %2181, %v1397_v17  }
 0x36e   :  { %1539 = vperm.xlu1 %2181, %v1398_v60  }
 0x372   :  { %1542 = vperm.xlu1 %2181, %v1399_v12  }
 0x37e   :  { %v968_v63 = vpop.xlane.xlu1 %967 }
 0x37f   :  { %v973_v50 = vrot.slane %v968_v63, %v2501_v42  ;;  %v977_v16 = vrot.slane %v968_v63, %v2677_v38  ;;  %v981_v62 = vrot.slane %v968_v63, %v2680_v39  ;;  %v985_v18 = vrot.slane %v968_v63, %v2683_v43 }
 0x380   :  { %v989_v9 = vrot.slane %v968_v63, %v2686_v41  ;;  %v993_v21 = vrot.slane %v968_v63, %v2689_v45  ;;  %v997_v26 = vrot.slane %v968_v63, %v2696_v52  ;;  %v1001_v46 = vrot.slane %v968_v63, %v2703_v61 }
 0x381   :  { %v1010_v55 = vsub.f32 %v2758_v6, %v973_v50  ;;  %v1011_v19 = vsub.f32 %v2756_v4, %v977_v16  ;;  %v1012_v10 = vsub.f32 %v2766_v11, %v981_v62  ;;  %v1013_v47 = vsub.f32 %v2764_v30, %v985_v18 }
 0x382   :  { %v1014_v37 = vsub.f32 %v831_v8, %v989_v9  ;;  %v1015_v33 = vsub.f32 %v2773_v14, %v993_v21  ;;  %v1016_v4 = vsub.f32 %v833_v35, %v997_v26  ;;  %v1017_v29 = vsub.f32 %v834_v0, %v1001_v46 }
 0x383   :  { %v1018_v34 = vmul.f32 1.442695, %v1010_v55  ;;  %v1020_v44 = vmul.f32 1.442695, %v1011_v19  ;;  %v1022_v49 = vmul.f32 1.442695, %v1012_v10 }
 0x384   :  { %v1024_v6 = vmul.f32 1.442695, %v1013_v47  ;;  %v1026_v11 = vmul.f32 1.442695, %v1014_v37  ;;  %v1028_v15 = vmul.f32 1.442695, %v1015_v33 }
 0x385   :  { %2201 = vpow2.f32 %v1018_v34  ;;  %v1030_v30 = vmul.f32 1.442695, %v1016_v4  ;;  %v1032_v1 = vmul.f32 1.442695, %v1017_v29 }
 0x386   :  { %2203 = vpow2.f32 %v1020_v44 }
 0x387   :  { %2205 = vpow2.f32 %v1022_v49 }
 0x388   :  { %2207 = vpow2.f32 %v1024_v6 }
 0x389   :  { %2209 = vpow2.f32 %v1026_v11 }
 0x38a   :  { %2211 = vpow2.f32 %v1028_v15 }
 0x38b   :  { %2213 = vpow2.f32 %v1030_v30 }
 0x38c   :  { %2215 = vpow2.f32 %v1032_v1 }
 0x392   :  { %v2816_v8 = vpop.eup %2201 }
 0x393   :  { %v2818_v28 = vpop.eup %2203  ;;  %1043 = vperm.xlu0 %2182, %v2816_v8  }
 0x394   :  { %1046 = vperm.xlu1 %2181, %v2818_v28   ;;  %v2822_v14 = vpop.eup %2205 }
 0x395   :  { %v2824_v35 = vpop.eup %2207 }
 0x396   :  { %v2828_v0 = vpop.eup %2209 }
 0x397   :  { %1049 = vperm.xlu0 %2182, %v2822_v14   ;;  %v2830_v27 = vpop.eup %2211 }
 0x398   :  { %1052 = vperm.xlu1 %2181, %v2824_v35   ;;  %v2834_v58 = vpop.eup %2213 }
 0x399   :  { %v2836_v54 = vpop.eup %2215 }
 0x39b   :  { %1055 = vperm.xlu0 %2182, %v2828_v0  }
 0x39c   :  { %1058 = vperm.xlu1 %2181, %v2830_v27  }
 0x39f   :  { %1061 = vperm.xlu0 %2182, %v2834_v58  }
 0x3a0   :  { %1064 = vperm.xlu1 %2181, %v2836_v54  }
 0x3d5   :  { %v1522_v17 = vpop.permute.xlu1 %1521  ;;  %v1528_v50 = vpop.permute.xlu0 %1527 }
 0x3d6   :  { %v1547_v16 = vrot.slane %v1522_v17, %v2640_v48  ;;  %v1555_v9 = vrot.slane %v1528_v50, %v2640_v48 }
 0x3d9   :  { %v1525_v59 = vpop.permute.xlu1 %1524 }
 0x3da   :  { %v1551_v12 = vrot.slane %v1525_v59, %v2640_v48 }
 0x3dc   :  { %v1576_v62 = vsel %vm950_vm6, %v1551_v12, %v1547_v16 }
 0x3dd   :  { %v1531_v60 = vpop.permute.xlu1 %1530  ;;  %v1577_v21 = vsel %vm952_vm8, %v1555_v9, %v1576_v62 }
 0x3de   :  { %v1559_v18 = vrot.slane %v1531_v60, %v2640_v48 }
 0x3e0   :  { %v1578_v34 = vsel %vm954_vm9, %v1559_v18, %v1577_v21 }
 0x3e1   :  { %v1534_v31 = vpop.permute.xlu1 %1533 }
 0x3e2   :  { %v1563_v55 = vrot.slane %v1534_v31, %v2640_v48 }
 0x3e4   :  { %v1579_v44 = vsel %vm956_vm12, %v1563_v55, %v1578_v34 }
 0x3e5   :  { %v1537_v63 = vpop.permute.xlu1 %1536 }
 0x3e6   :  { %v1567_v10 = vrot.slane %v1537_v63, %v2640_v48 }
 0x3e8   :  { %v1580_v37 = vsel %vm958_vm13, %v1567_v10, %v1579_v44 }
 0x3e9   :  { %v1540_v19 = vpop.permute.xlu1 %1539 }
 0x3ea   :  { %v1571_v47 = vrot.slane %v1540_v19, %v2640_v48 }
 0x3ec   :  { %v1581_v46 = vsel %vm960_vm3, %v1571_v47, %v1580_v37 }
 0x3ed   :  { %v1543_v26 = vpop.permute.xlu1 %1542 }
 0x3ee   :  { %v1575_v49 = vrot.slane %v1543_v26, %v2640_v48 }
 0x3f0   :  { %v1582_v33 = vsel %vm962_vm4, %v1575_v49, %v1581_v46 }
 0x3f1   :  { %2137 = vmatmul.mubr.msk.f32.vlgmr.msra.gmra.mxu1 %vm965_vm5, %v1582_v33 }
 0x3f2   :  { %2158 = vmatprep.mubr.msk.f32.mxu1 %vm2266_vm1, %v2265_v2 }
 0x40e   :  { %v1044_v6 = vpop.permute.xlu0 %1043 }
 0x40f   :  { %v1047_v4 = vpop.permute.xlu1 %1046  ;;  %v1069_v11 = vrot.slane %v1044_v6, %v2640_v48 }
 0x410   :  { %v1073_v29 = vrot.slane %v1047_v4, %v2640_v48 }
 0x412   :  { %v1050_v15 = vpop.permute.xlu0 %1049  ;;  %v1098_v17 = vsel %vm950_vm6, %v1073_v29, %v1069_v11 }
 0x413   :  { %v1077_v30 = vrot.slane %v1050_v15, %v2640_v48  ;;  %v1053_v1 = vpop.permute.xlu1 %1052 }
 0x414   :  { %v1081_v59 = vrot.slane %v1053_v1, %v2640_v48  ;;  %v2928_v1 = vld [vmem:[%s3045_s0] sm:$0xff] }
 0x415   :  { %v1099_v60 = vsel %vm952_vm8, %v1077_v30, %v1098_v17  ;;  %v1830_v17 = vld [vmem:[%s3026_s17] sm:$0xff]  ;;  %v1402_v23 = vadd.f32 %v2928_v1, %v488_v40 }
 0x416   :  { %v1056_v31 = vpop.permute.xlu0 %1055  ;;  %v1100_v50 = vsel %vm954_vm9, %v1081_v59, %v1099_v60  ;;  %v2220_v59 = vld [vmem:[%s3048_s30] sm:$0xff]  ;;  %v1400_v60 = vadd.f32 %v2928_v1, %v486_v51 }
 0x417   :  { %v1085_v12 = vrot.slane %v1056_v31, %v2640_v48  ;;  %v1059_v63 = vpop.permute.xlu1 %1058 }
 0x418   :  { %v1089_v16 = vrot.slane %v1059_v63, %v2640_v48 }
 0x419   :  { %v1101_v62 = vsel %vm956_vm12, %v1085_v12, %v1100_v50  ;;  %v1401_v50 = vadd.f32 %v2928_v1, %v487_v5  ;;  %v1403_v5 = vadd.f32 %v2928_v1, %v489_v7 }
 0x41a   :  { %v1062_v18 = vpop.permute.xlu0 %1061  ;;  %v1102_v19 = vsel %vm958_vm13, %v1089_v16, %v1101_v62 }
 0x41b   :  { %v1093_v9 = vrot.slane %v1062_v18, %v2640_v48  ;;  %v1065_v55 = vpop.permute.xlu1 %1064 }
 0x41c   :  { %v1097_v10 = vrot.slane %v1065_v55, %v2640_v48 }
 0x41d   :  { %v1103_v21 = vsel %vm960_vm3, %v1093_v9, %v1102_v19 }
 0x41e   :  { %v1104_v47 = vsel %vm962_vm4, %v1097_v10, %v1103_v21 }
 0x41f   :  { %v1106_v34 = vsel %vm965_vm5, %v1104_v47, 0.0 }
 0x420   :  { %1107 = vadd.xlane.f32.xlu0 %v1106_v34 }
 0x4a9   :  { %v1108_v44 = vpop.xlane.xlu0 %1107 }
 0x4aa   :  { %2217 = vrcp.f32 %v1108_v44 }
 0x4b1   :  { %v2874_v26 = vpop.f32.mrf.mxu1 }
 0x4b3   :  { %v2138_v37 = vpop.f32.mrf.mxu1 }
 0x4b7   :  { %v2218_v49 = vpop.eup %2217 }
 0x4b8   :  { %v1114_v46 = vrot.slane %v2218_v49, %v2501_v42  ;;  %v1118_v6 = vrot.slane %v2218_v49, %v2677_v38  ;;  %v1122_v4 = vrot.slane %v2218_v49, %v2680_v39  ;;  %v1126_v29 = vrot.slane %v2218_v49, %v2683_v43 }
 0x4b9   :  { %v1130_v30 = vrot.slane %v2218_v49, %v2686_v41  ;;  %v1134_v38 = vrot.slane %v2218_v49, %v2689_v45  ;;  %v1138_v39 = vrot.slane %v2218_v49, %v2696_v52  ;;  %v1142_v43 = vrot.slane %v2218_v49, %v2703_v61  ;;  %v1662_v41 = vld [vmem:[%s3024_s15 + $0x18] sm:$0xff]  ;;  %v1661_v45 = vld [vmem:[%s3024_s15 + $0x10] sm:$0xff] }
 0x4ba   :  { %v1151_v33 = vmul.f32 %v2816_v8, %v1114_v46  ;;  %v1152_v48 = vmul.f32 %v2818_v28, %v1118_v6  ;;  %v1153_v11 = vmul.f32 %v2822_v14, %v1122_v4  ;;  %v1154_v15 = vmul.f32 %v2824_v35, %v1126_v29  ;;  %v1658_v52 = vld [vmem:[%s3023_s14 + $0x18] sm:$0xff]  ;;  %2140 = vmatpush3.msra.mxu0 %v1662_v41  ;;  %v1657_v61 = vld [vmem:[%s3023_s14 + $0x10] sm:$0xff]  ;;  %v1660_v35 = vld [vmem:[%s3024_s15 + $0x8] sm:$0xff] }
 0x4bb   :  { %v1155_v42 = vmul.f32 %v2828_v0, %v1130_v30  ;;  %v1156_v8 = vmul.f32 %v2830_v27, %v1134_v38  ;;  %v1157_v28 = vmul.f32 %v2834_v58, %v1138_v39  ;;  %v1158_v14 = vmul.f32 %v2836_v54, %v1142_v43  ;;  %2151 = vmatpush3.msra.mxu1 %v1658_v52  ;;  %v1656_v0 = vld [vmem:[%s3023_s14 + $0x8] sm:$0xff]  ;;  %v1659_v27 = vld [vmem:[%s3024_s15] sm:$0xff] }
 0x4bc   :  { %1410 = vperm.xlu1 %2181, %v1151_v33   ;;  %2141 = vmatprep.subr.mxu0 %v2265_v2  ;;  %v1655_v58 = vld [vmem:[%s3023_s14] sm:$0xff]  ;;  %v1831_v54 = vld [vmem:[%s3026_s17 + $0x8] sm:$0xff]  ;;  %v1405_v39 = vadd.f32 %v2928_v1, %v491_v24 }
 0x4bd   :  { %2152 = vmatprep.subr.mxu1 %v2265_v2  ;;  %2142 = vmatpush3.msra.mxu0 %v1661_v45 }
 0x4be   :  { %2153 = vmatpush3.msra.mxu1 %v1657_v61  ;;  %2143 = vmatprep.subr.mxu0 %v2265_v2 }
 0x4bf   :  { %2154 = vmatprep.subr.mxu1 %v2265_v2  ;;  %2144 = vmatpush3.msra.mxu0 %v1660_v35 }
 0x4c0   :  { %1415 = vperm.xlu1 %2181, %v1152_v48   ;;  %2155 = vmatpush3.msra.mxu1 %v1656_v0  ;;  %v1404_v48 = vadd.f32 %v2928_v1, %v490_v20  ;;  %v1406_v0 = vadd.f32 %v2928_v1, %v492_v32 }
 0x4c1   :  { %2145 = vmatprep.subr.mxu0 %v2265_v2  ;;  %2156 = vmatprep.subr.mxu1 %v2265_v2 }
 0x4c2   :  { %2146 = vmatpush3.msra.mxu0 %v1659_v27  ;;  %2157 = vmatpush3.msra.mxu1 %v1655_v58 }
 0x4c3   :  { %2159 = vmatmul.mubr.msk.f32.vlgmr.msra.gmra.mxu1 %vm77_vm0, %v2928_v1  ;;  %2168 = vmatprep.subr.mxu1 %v2265_v2 }
 0x4c4   :  { %1420 = vperm.xlu1 %2181, %v1153_v11   ;;  %2161 = vmatprep.subr.mxu0 %v2265_v2 }
 0x4c5   :  { %2169 = vmatpush3.msra.mxu1 %v1831_v54  ;;  %2172 = vmatprep.mubr.msk.f32.mxu1 %vm2266_vm1, %v2265_v2 }
 0x4c6   :  { %2170 = vmatprep.subr.mxu1 %v2265_v2 }
 0x4c7   :  { %2171 = vmatpush3.msra.mxu1 %v1830_v17 }
 0x4c8   :  { %1425 = vperm.xlu1 %2181, %v1154_v15   ;;  %2173 = vmatmul.mubr.msk.f32.vlgmr.msra.gmra.mxu1 %vm235_vm2, %v2220_v59 }
 0x4cc   :  { %1430 = vperm.xlu1 %2181, %v1155_v42  }
 0x4d0   :  { %1435 = vperm.xlu1 %2181, %v1156_v8  }
 0x4d4   :  { %1440 = vperm.xlu1 %2181, %v1157_v28  }
 0x4d8   :  { %1445 = vperm.xlu1 %2181, %v1158_v14  }
 0x537   :  { %v1411_v31 = vpop.permute.xlu1 %1410 }
 0x538   :  { %v1448_v12 = vmul.f32 %v1411_v31, %v1400_v60 }
 0x53a   :  { %v1456_v63 = vsel %vm77_vm0, %v1448_v12, 0.0 }
 0x53b   :  { %v1457_v16 = vrot.slane %v1456_v63, 4  ;;  %v1416_v62 = vpop.permute.xlu1 %1415 }
 0x53c   :  { %v1449_v18 = vmul.f32 %v1416_v62, %v1401_v50 }
 0x53d   :  { %v1458_v9 = vadd.f32 %v1457_v16, %v1456_v63  ;;  %v1407_v63 = vadd.f32 %v2928_v1, %v493_v25 }
 0x53e   :  { %v1463_v55 = vsel %vm77_vm0, %v1449_v18, 0.0 }
 0x53f   :  { %v1459_v19 = vrot.slane %v1458_v9, 2  ;;  %v1464_v51 = vrot.slane %v1463_v55, 4  ;;  %v1421_v10 = vpop.permute.xlu1 %1420 }
 0x540   :  { %v1450_v21 = vmul.f32 %v1421_v10, %v1402_v23 }
 0x541   :  { %v1460_v47 = vadd.f32 %v1459_v19, %v1458_v9  ;;  %v1465_v34 = vadd.f32 %v1464_v51, %v1463_v55 }
 0x542   :  { %v1470_v3 = vsel %vm77_vm0, %v1450_v21, 0.0 }
 0x543   :  { %v1466_v44 = vrot.slane %v1465_v34, 2  ;;  %v1471_v37 = vrot.slane %v1470_v3, 4  ;;  %v1426_v49 = vpop.permute.xlu1 %1425  ;;  %v1461_v33 = vrot.slane %v1460_v47, 1 }
 0x544   :  { %v1451_v46 = vmul.f32 %v1426_v49, %v1403_v5 }
 0x545   :  { %v1467_v56 = vadd.f32 %v1466_v44, %v1465_v34  ;;  %v1472_v6 = vadd.f32 %v1471_v37, %v1470_v3  ;;  %v1462_v30 = vadd.f32 %v1461_v33, %v1460_v47 }
 0x546   :  { %v1477_v40 = vsel %vm77_vm0, %v1451_v46, 0.0 }
 0x547   :  { %v1468_v4 = vrot.slane %v1467_v56, 1  ;;  %v1473_v11 = vrot.slane %v1472_v6, 2  ;;  %v1478_v29 = vrot.slane %v1477_v40, 4  ;;  %v1431_v15 = vpop.permute.xlu1 %1430 }
 0x548   :  { %v1452_v13 = vmul.f32 %v1431_v15, %v1404_v48 }
 0x549   :  { %v1469_v7 = vadd.f32 %v1468_v4, %v1467_v56  ;;  %v1474_v42 = vadd.f32 %v1473_v11, %v1472_v6  ;;  %v1479_v38 = vadd.f32 %v1478_v29, %v1477_v40  ;;  %v1833_v56 = vld [vmem:[%s3027_s18 + $0x8] sm:$0xff]  ;;  %v1832_v40 = vld [vmem:[%s3027_s18] sm:$0xff]  ;;  %s2269_s18 = smov [#allocation4]  }
 0x54a   :  { %v1484_v8 = vsel %vm77_vm0, %v1452_v13, 0.0  ;;  %v2034_v13 = vld [vmem:[%s3025_s16] ss:$0 sm:$0xff]  ;;  %s1993_s29 = sshll.u32 %s2269_s18, 4  ;;  %s1994_s29 = int_to_ptr.vmem [resolvable:$true] %s1993_s29 }
 0x54b   :  { %v1671_v28 = vsel %vm950_vm6, %v1469_v7, %v1462_v30  ;;  %v1475_v36 = vrot.slane %v1474_v42, 1  ;;  %v1480_v43 = vrot.slane %v1479_v38, 2  ;;  %v1485_v20 = vrot.slane %v1484_v8, 4  ;;  %v1436_v14 = vpop.permute.xlu1 %1435  ;;  %s2221_s16 = scalar_lea.vmem %s1994_s29, 128  ;;  %p2226_p1 = scmp.lt.s32.totalorder %s1994_s29, %s1994_s29 }
 0x54c   :  { %v1453_v41 = vmul.f32 %v1436_v14, %v1405_v39  ;;  %p2222_p0 = scmp.ne.s32.totalorder %s1994_s29, %s2221_s16  ;;  %p2227_p2 = scmp.lt.s32.totalorder %s2221_s16, %s2221_s16 }
 0x54d   :  { %v1476_v45 = vadd.f32 %v1475_v36, %v1474_v42  ;;  %v1481_v52 = vadd.f32 %v1480_v43, %v1479_v38  ;;  %v1486_v61 = vadd.f32 %v1485_v20, %v1484_v8 }
 0x54e   :  { %v1491_v35 = vsel %vm77_vm0, %v1453_v41, 0.0  ;;  %p2228_p3 = por %p2227_p2, %p2226_p1 }
 0x54f   :  { %v1672_v22 = vsel %vm952_vm8, %v1476_v45, %v1671_v28  ;;  %v1482_v27 = vrot.slane %v1481_v52, 1  ;;  %v1487_v24 = vrot.slane %v1486_v61, 2  ;;  %v1492_v58 = vrot.slane %v1491_v35, 4  ;;  %v1441_v54 = vpop.permute.xlu1 %1440 }
 0x550   :  { %v1454_v17 = vmul.f32 %v1441_v54, %v1406_v0  ;;  %p2229_p4 = pnand %p2228_p3, %p2222_p0 }
 0x551   :  { %v1483_v59 = vadd.f32 %v1482_v27, %v1481_v52  ;;  %v1488_v60 = vadd.f32 %v1487_v24, %v1486_v61  ;;  %v1493_v31 = vadd.f32 %v1492_v58, %v1491_v35 }
 0x552   :  { %v1498_v12 = vsel %vm77_vm0, %v1454_v17, 0.0 }
 0x553   :  { %v1673_v53 = vsel %vm954_vm9, %v1483_v59, %v1672_v22  ;;  %v1489_v50 = vrot.slane %v1488_v60, 1  ;;  %v1494_v32 = vrot.slane %v1493_v31, 2  ;;  %v1499_v16 = vrot.slane %v1498_v12, 4  ;;  %v1446_v62 = vpop.permute.xlu1 %1445 }
 0x554   :  { %v1455_v18 = vmul.f32 %v1446_v62, %v1407_v63 }
 0x555   :  { %v1490_v9 = vadd.f32 %v1489_v50, %v1488_v60  ;;  %v1495_v55 = vadd.f32 %v1494_v32, %v1493_v31  ;;  %v1500_v23 = vadd.f32 %v1499_v16, %v1498_v12 }
 0x556   :  { %v1505_v19 = vsel %vm77_vm0, %v1455_v18, 0.0 }
 0x557   :  { %v1674_v51 = vsel %vm956_vm12, %v1490_v9, %v1673_v53  ;;  %v1496_v10 = vrot.slane %v1495_v55, 1  ;;  %v1501_v21 = vrot.slane %v1500_v23, 2  ;;  %v1506_v47 = vrot.slane %v1505_v19, 4 }
 0x559   :  { %v1497_v57 = vadd.f32 %v1496_v10, %v1495_v55  ;;  %v1502_v34 = vadd.f32 %v1501_v21, %v1500_v23  ;;  %v1507_v25 = vadd.f32 %v1506_v47, %v1505_v19 }
 0x55b   :  { %v1675_v1 = vsel %vm958_vm13, %v1497_v57, %v1674_v51  ;;  %v1503_v3 = vrot.slane %v1502_v34, 1  ;;  %v1508_v5 = vrot.slane %v1507_v25, 2 }
 0x55d   :  { %v1504_v44 = vadd.f32 %v1503_v3, %v1502_v34  ;;  %v1509_v37 = vadd.f32 %v1508_v5, %v1507_v25 }
 0x55f   :  { %v1510_v49 = vrot.slane %v1509_v37, 1  ;;  %v1676_v46 = vsel %vm960_vm3, %v1504_v44, %v1675_v1 }
 0x561   :  { %v1511_v33 = vadd.f32 %v1510_v49, %v1509_v37 }
 0x563   :  { %v1677_v6 = vsel %vm962_vm4, %v1511_v33, %v1676_v46 }
 0x564   :  { %2148 = vmatmul.mubr.msk.f32.vlgmr.msra.gmra.mxu0 %vm77_vm0, %v1677_v6 }
 0x565   :  { %2162 = vmatpush3.msra.mxu0 %v1833_v56  ;;  %2165 = vmatprep.mubr.msk.f32.mxu0 %vm2266_vm1, %v2265_v2 }
 0x566   :  { %2163 = vmatprep.subr.mxu0 %v2265_v2  ;;  %v2037_v2 = vld [vmem:[%s3028_s19] ss:$0 sm:$0xff] }
 0x567   :  { %2164 = vmatpush3.msra.mxu0 %v1832_v40 }
 0x568   :  { %2166 = vmatmul.mubr.msk.f32.vlgmr.msra.gmra.mxu0 %vm235_vm2, %v2874_v26 }
 0x583   :  { %v1816_v48 = vpop.f32.mrf.mxu1 }
 0x585   :  { %v2160_v4 = vpop.f32.mrf.mxu1 }
 0x588   :  { %v1973_v11 = vpop.f32.mrf.mxu1 }
 0x58a   :  { %v2174_v29 = vpop.f32.mrf.mxu1 }
 0x624   :  { %v1746_v15 = vpop.f32.mrf.mxu0 }
 0x625   :  { %v1817_v30 = vadd.f32 %v1816_v48, %v1746_v15 }
 0x626   :  { %v2149_v7 = vpop.f32.mrf.mxu0 }
 0x627   :  { %v1827_v42 = vadd.f32 %v2034_v13, %v1817_v30 }
 0x628   :  { %v1903_v38 = vpop.f32.mrf.mxu0 }
 0x629   :  { %v1974_v26 = vadd.f32 %v1973_v11, %v1903_v38  ;;  %v1828_v8 = vmax.f32 %v1827_v42, 0.0 }
 0x62a   :  { %v2167_v39 = vpop.f32.mrf.mxu0 }
 0x62b   :  { %v1984_v28 = vadd.f32 %v2037_v2, %v1974_v26  ;;  %1829 = vst.msk [vmem:[#allocation4] sm:$0xff] %vm77_vm0, %v1828_v8 }
 0x62c   :  { %2232 = shalt.err (!%p2229_p4)
}
 0x62d   :  { %1996 = dma.vmem_to_hbm [thread:$0]  %s1994_s29, 128, %s3029_s20, [#allocation5]   ;;  %v1985_v36 = vmax.f32 %v1984_v28, 0.0 }
 0x62e   :  { %s2241_s19 = scalar_lea.vmem %s2004_s5, 128  ;;  %p2246_p6 = scmp.lt.s32.totalorder %s2004_s5, %s2004_s5 }
 0x62f   :  { %1986 = vst.msk [vmem:[#allocation6] sm:$0xff] %vm235_vm2, %v1985_v36  ;;  %p2242_p5 = scmp.ne.s32.totalorder %s2004_s5, %s2241_s19  ;;  %p2247_p7 = scmp.lt.s32.totalorder %s2241_s19, %s2241_s19 }
 0x631   :  { %p2248_p8 = por %p2247_p7, %p2246_p6 }
 0x633   :  { %p2249_p9 = pnand %p2248_p8, %p2242_p5 }
 0x635   :  { %2252 = shalt.err (!%p2249_p9)
}
 0x636   :  { %2006 = dma.vmem_to_hbm [thread:$0]  %s2004_s5, 128, %s3030_s21, [#allocation7]  }
 0x637   :  { %2261 = dma.done.wait [#allocation5], 128  }
 0x638   :  { %2262 = vsyncadd [#allocation5], 4294967168 }
 0x639   :  { %2263 = dma.done.wait [#allocation7], 128  }
 0x63a   :  { %2264 = vsyncadd [#allocation7], 4294967168 }
 0x63b   :  { %2013 = vsyncpa [#allocation5], 1 }
 0x63c   :  { %2014 = vsyncpa [#allocation7], 1 }

</bundles_post_ra>
